<compile_context>
chip_gen: v6e
topology: v6e:2x2x1
jax: 0.10.0
libtpu: 0.0.40
codegen_flags: <defaults>
</compile_context>

<pallas_src>
import functools

import jax
import jax.numpy as jnp
from jax import lax
from jax.experimental import pallas as pl
from jax.experimental.pallas import tpu as pltpu

NEG_BIG = -1e30          # stand-in for -inf (keeps exp/compare NaN-free)
INT_MIN = -2147483648    # sentinel for the packed ordering keys


def _kmeans_kernel(x_ref, feat_hbm, c0_ref, cent_out_ref, cf_out_ref,
                   cent_carry_ref, w_scratch, fbuf, fsem, *,
                   n_clusters, max_iter, tolerance, max_neighbors, feat_chunk):
    K = n_clusters
    D, N = x_ref.shape                      # lane-dense points: (D, N)
    CHUNK = feat_chunk
    nc = N // CHUNK

    b = pl.program_id(0)

    # Seed the cross-batch centroid carry from the provided init centroids.
    @pl.when(b == 0)
    def _():
        cent_carry_ref[...] = c0_ref[...].astype(jnp.float32)

    X = x_ref[...].astype(jnp.float32)                           # (D, N)
    X_aug = jnp.concatenate([X, jnp.ones((1, N), jnp.float32)], axis=0)  # (D+1, N)

    clus_col = lax.broadcasted_iota(jnp.int32, (K, 1), 0)        # (K, 1)
    k_bits = max(1, (K - 1).bit_length())
    K_HI = -(1 << k_bits)
    K_LO = (1 << k_bits) - 1
    rank_col = (K - 1) - clus_col                                # lower cluster id wins ties

    def assign(C2, c_sq):
        # similarity up to a per-point constant: 2 x.c - |c|^2  (|x|^2 dropped,
        # it cancels in the per-point argmax over clusters).
        xc = C2[:, 0:1] * X_aug[0:1, :]
        for d in range(1, D):
            xc = xc + C2[:, d:d + 1] * X_aug[d:d + 1, :]
        return xc - c_sq                                         # (K, N)

    def sortable_bits(v):
        # monotonic int32 key for f32 values
        bits = pltpu.bitcast(v, jnp.int32)
        return jnp.where(bits >= 0, bits, INT_MIN - bits)

    # ---- fit_predict loop: runtime-terminated at convergence ----------------
    def cond(carry):
        it, _, _, _, done = carry
        return jnp.logical_and(it < max_iter, jnp.logical_not(done))

    def body(carry):
        it, C, counts, _, _ = carry
        C2 = 2.0 * C
        c_sq = jnp.sum(C * C, axis=1, keepdims=True)             # (K, 1)
        s = assign(C2, c_sq)                                     # (K, N)
        # packed argmax over clusters: one sublane max-reduce, low id wins ties
        packed = (sortable_bits(s) & K_HI) | rank_col
        best = jnp.max(packed, axis=0, keepdims=True)            # (1, N)
        closest = (K - 1) - (best & K_LO)                        # (1, N) int32
        mask = (closest == clus_col).astype(jnp.float32)         # (K, N)
        # per-cluster coordinate sums + counts in ONE MXU contraction over N
        sums = jnp.einsum('kn,dn->kd', mask, X_aug,
                          preferred_element_type=jnp.float32)    # (K, D+1)
        cnt = sums[:, D:D + 1]                                   # (K, 1)
        c_grad = sums[:, :D] / (cnt + 1e-8)                      # (K, D)
        diff = c_grad - C
        err = jnp.sum(diff * diff)                               # scalar
        lr = 0.9 / (counts + 1e-8) + 0.1                         # counts BEFORE update (torch order)
        new_C = C * (1.0 - lr) + c_grad * lr
        new_counts = counts + cnt
        done = err <= tolerance                                  # torch: break AFTER the update
        return (it + 1, new_C, new_counts, closest, done)

    init = (jnp.array(0, jnp.int32),
            cent_carry_ref[...],
            jnp.ones((K, 1), jnp.float32),
            jnp.zeros((1, N), jnp.int32),
            jnp.zeros((), jnp.bool_))
    _, C_fin, _, closest, _ = lax.while_loop(cond, body, init)

    # ---- feature streaming (HBM -> VMEM chunks, double-buffered) ------------
    def feat_copy(c, slot):
        start = pl.multiple_of(c * CHUNK, CHUNK)
        return pltpu.make_async_copy(
            feat_hbm.at[b, :, pl.ds(start, CHUNK)], fbuf.at[slot], fsem.at[slot])

    feat_copy(0, 0).start()      # overlap first chunk DMA with the top-k/softmax

    # ---- per-cluster masked top-k + softmax weights --------------------------
    C2 = 2.0 * C_fin
    c_sq = jnp.sum(C_fin * C_fin, axis=1, keepdims=True)
    x_sq = X[0:1, :] * X[0:1, :]
    for d in range(1, D):
        x_sq = x_sq + X[d:d + 1, :] * X[d:d + 1, :]
    s_fin = assign(C2, c_sq) - x_sq                              # true euclidean similarity
    in_cluster = closest == clus_col                             # (K, N)

    lane_iota = lax.broadcasted_iota(jnp.int32, (1, N), 1)
    n_bits = max(1, (N - 1).bit_length())
    rank_lane = (N - 1) - lane_iota                              # lower lane wins ties
    packed = (sortable_bits(s_fin) & -(1 << n_bits)) | rank_lane
    keys = jnp.where(in_cluster, packed, INT_MIN)
    for _ in range(max_neighbors):                               # unrolled picks
        kmax = jnp.max(keys, axis=1, keepdims=True)              # (K, 1) XLU reduce
        keys = jnp.where(keys == kmax, INT_MIN, keys)            # remove the pick
    sel = jnp.logical_and(in_cluster, keys == INT_MIN)           # removed keys == top-k

    masked = jnp.where(in_cluster, s_fin, NEG_BIG)
    row_max = jnp.max(masked, axis=1, keepdims=True)
    safe_max = jnp.where(row_max > NEG_BIG * 0.5, row_max, 0.0)
    e = jnp.exp(jnp.where(sel, s_fin, NEG_BIG) - safe_max)       # 0 off-selection
    denom = jnp.maximum(jnp.sum(e, axis=1, keepdims=True), 1e-30)
    w_scratch[...] = (e * (1.0 / denom)).astype(jnp.bfloat16)    # softmax weights (K, N)

    cent_carry_ref[...] = C_fin                                  # carry to batch b+1
    cent_out_ref[...] = C_fin.astype(cent_out_ref.dtype)
    cf_out_ref[...] = jnp.zeros_like(cf_out_ref)

    # ---- chunked (K, F) feature aggregation on the MXU -----------------------
    @pl.loop(0, nc)
    def _(c):
        slot = c & 1
        feat_copy(c, slot).wait()

        @pl.when(c + 1 < nc)
        def _():
            feat_copy(c + 1, 1 - slot).start()

        start = pl.multiple_of(c * CHUNK, CHUNK)
        w_chunk = w_scratch[:, pl.ds(start, CHUNK)]              # (K, CHUNK) bf16
        cf_out_ref[...] += jnp.einsum('kn,fn->kf', w_chunk, fbuf[slot],
                                      preferred_element_type=jnp.float32)


def _pick_chunk(n):
    # 128-multiple chunks keep v5e MXU contraction passes packed (also fine on v6e/v7x)
    for c in (4096, 2048, 1024, 512, 256, 128):
        if n % c == 0:
            return c
    return n


@functools.partial(jax.jit, static_argnames=("n_clusters", "max_iter",
                                              "tolerance", "max_neighbors"))
def kmeans_forward(points, features, centroids, *, n_clusters, max_iter=100,
                   tolerance=1e-4, max_neighbors=15):
    """KMeans.forward (euclidean, differentiable=False).

    Returns (cluster_centroids [bz,K,3], cluster_features [bz,F,K], centroids [K,3]).
    """
    bz, N, D = points.shape
    F_dim = features.shape[1]
    K = n_clusters
    chunk = _pick_chunk(N)

    pts_t = jnp.transpose(points, (0, 2, 1)).astype(jnp.float32)   # (bz, D, N)
    feats = features.astype(jnp.bfloat16)                          # halve HBM traffic / VMEM
    cents0 = centroids.astype(jnp.float32)

    kernel = functools.partial(_kmeans_kernel, n_clusters=K, max_iter=max_iter,
                               tolerance=tolerance, max_neighbors=max_neighbors,
                               feat_chunk=chunk)

    # VMEM budget: double-buffered points + tiny centroid blocks + scratch
    # (bf16 weights, 2-deep feature chunks) + (K,N) epilogue working set.
    est = (2 * D * N * 4 + 4 * K * D * 4 + 2 * K * F_dim * 4
           + K * D * 4 + K * N * 2 + 2 * F_dim * chunk * 2
           + (D + 1) * N * 4 + 10 * K * N * 4)
    vmem_limit = int(min(96 * 1024 * 1024, max(32 * 1024 * 1024, 2 * est)))

    cluster_centroids, cf_kf = pl.pallas_call(
        kernel,
        out_shape=(jax.ShapeDtypeStruct((bz, K, D), jnp.float32),
                   jax.ShapeDtypeStruct((bz, K, F_dim), jnp.float32)),
        grid=(bz,),
        in_specs=[pl.BlockSpec((None, D, N), lambda b: (b, 0, 0)),
                  pl.BlockSpec(memory_space=pl.ANY),               # features stay in HBM; streamed
                  pl.BlockSpec((K, D), lambda b: (0, 0))],
        out_specs=(pl.BlockSpec((None, K, D), lambda b: (b, 0, 0)),
                   pl.BlockSpec((None, K, F_dim), lambda b: (b, 0, 0))),
        scratch_shapes=[pltpu.VMEM((K, D), jnp.float32),            # centroid carry
                        pltpu.VMEM((K, N), jnp.bfloat16),           # softmax weights
                        pltpu.VMEM((2, F_dim, chunk), jnp.bfloat16),  # feature chunk dbuf
                        pltpu.SemaphoreType.DMA((2,))],
        compiler_params=pltpu.CompilerParams(
            dimension_semantics=("arbitrary",),                     # batch carry is sequential
            vmem_limit_bytes=vmem_limit),
    )(pts_t, feats, cents0)

    # Module output layout is (bz, F, K); kernel writes lane-dense (K, F).
    cluster_features = jnp.transpose(cf_kf, (0, 2, 1))
    # differentiable=False: cluster_centroids[b] == running centroids after batch b.
    final_centroids = cluster_centroids[-1]
    return cluster_centroids, cluster_features, final_centroids


if __name__ == "__main__":
    key = jax.random.PRNGKey(0)
    kp, kf = jax.random.split(key)
    bz, N, D = 2, 256, 3
    F_dim, K = 16, 8

    points = jax.random.normal(kp, (bz, N, D), dtype=jnp.float32)
    features = jax.random.normal(kf, (bz, F_dim, N), dtype=jnp.float32)

    # TODO(synk): torch picks random initial centroids (np.random.choice /
    # random.choice); we use a deterministic init (first K points of batch 0).
    centroids0 = points[0, :K, :]

    cluster_centroids, cluster_features, final_centroids = kmeans_forward(
        points, features, centroids0,
        n_clusters=K, max_iter=100, tolerance=1e-4, max_neighbors=15)

    jax.block_until_ready((cluster_centroids, cluster_features, final_centroids))
    assert cluster_centroids.shape == (bz, K, D)
    assert cluster_features.shape == (bz, F_dim, K)
    assert final_centroids.shape == (K, D)
    assert bool(jnp.all(jnp.isfinite(cluster_centroids)))
    assert bool(jnp.all(jnp.isfinite(cluster_features)))
    print("KERNEL_OK")
</pallas_src>

<mosaic_0001>
module attributes {stable_mosaic.version = 11 : i64} {
  func.func @_kmeans_kernel(%arg0: i32, %arg1: memref<1x3x256xf32, #tpu.memory_space<vmem>>, %arg2: memref<2x16x256xbf16, #tpu.memory_space<any>>, %arg3: memref<8x3xf32, #tpu.memory_space<vmem>>, %arg4: memref<1x8x3xf32, #tpu.memory_space<vmem>>, %arg5: memref<1x8x16xf32, #tpu.memory_space<vmem>>, %arg6: memref<8x3xf32, #tpu.memory_space<vmem>>, %arg7: memref<8x256xbf16, #tpu.memory_space<vmem>>, %arg8: memref<2x16x256xbf16, #tpu.memory_space<vmem>>, %arg9: memref<2x!tpu.dma_semaphore, #tpu.memory_space<semaphore_mem>>) attributes {dimension_semantics = [#tpu.dimension_semantics<arbitrary>], iteration_bounds = array<i64: 2>, scalar_prefetch = 0 : i64, scratch_operands = 4 : i64, tpu.core_type = #tpu.core_type<tc>, window_params = [{transform_indices = @transform_0, window_bounds = array<i64: 1, 3, 256>}, {}, {pipeline_mode = #tpu.pipeline_mode<synchronous>, transform_indices = @transform_2, window_bounds = array<i64: 8, 3>}, {transform_indices = @transform_3, window_bounds = array<i64: 1, 8, 3>}, {transform_indices = @transform_4, window_bounds = array<i64: 1, 8, 16>}]} {
    %c0_i32 = arith.constant 0 : i32
    %0 = arith.cmpi eq, %arg0, %c0_i32 : i32
    %1 = arith.extui %0 : i1 to i32
    %c0_i32_0 = arith.constant 0 : i32
    %2 = arith.cmpi ne, %1, %c0_i32_0 : i32
    scf.if %2 {
      %c0_89 = arith.constant 0 : index
      %c0_90 = arith.constant 0 : index
      %229 = vector.load %arg3[%c0_89, %c0_90] : memref<8x3xf32, #tpu.memory_space<vmem>>, vector<8x3xf32>
      %c0_91 = arith.constant 0 : index
      %c0_92 = arith.constant 0 : index
      %230 = vector.load %arg6[%c0_91, %c0_92] : memref<8x3xf32, #tpu.memory_space<vmem>>, vector<8x3xf32>
      tpu.vector_store %arg6[%c0_91, %c0_92], %229 {strides = array<i32>} : memref<8x3xf32, #tpu.memory_space<vmem>>, vector<8x3xf32>,
    } else {
    }
    %c0 = arith.constant 0 : index
    %c0_1 = arith.constant 0 : index
    %c0_2 = arith.constant 0 : index
    %3 = vector.load %arg1[%c0, %c0_1, %c0_2] : memref<1x3x256xf32, #tpu.memory_space<vmem>>, vector<1x3x256xf32>
    %4 = vector.shape_cast %3 : vector<1x3x256xf32> to vector<3x256xf32>
    %cst = arith.constant 1.000000e+00 : f32
    %5 = vector.broadcast %cst : f32 to vector<1x256xf32>
    %6 = tpu.concatenate %4, %5 in 0 : vector<3x256xf32>, vector<1x256xf32> -> vector<4x256xf32>
    %7 = tpu.iota {dimensions = array<i32: 0>} : vector<8x1xi32>
    %c7_i32 = arith.constant 7 : i32
    %8 = vector.broadcast %c7_i32 : i32 to vector<8x1xi32>
    %9 = arith.subi %8, %7 : vector<8x1xi32>
    %c0_3 = arith.constant 0 : index
    %c0_4 = arith.constant 0 : index
    %10 = vector.load %arg6[%c0_3, %c0_4] : memref<8x3xf32, #tpu.memory_space<vmem>>, vector<8x3xf32>
    %cst_5 = arith.constant 1.000000e+00 : f32
    %11 = vector.broadcast %cst_5 : f32 to vector<8x1xf32>
    %c0_i32_6 = arith.constant 0 : i32
    %12 = vector.broadcast %c0_i32_6 : i32 to vector<1x256xi32>
    %c0_i32_7 = arith.constant 0 : i32
    %false = arith.constant false
    %13:5 = scf.while (%arg10 = %c0_i32_7, %arg11 = %10, %arg12 = %11, %arg13 = %12, %arg14 = %false) : (i32, vector<8x3xf32>, vector<8x1xf32>, vector<1x256xi32>, i1) -> (i32, vector<8x3xf32>, vector<8x1xf32>, vector<1x256xi32>, i1) {
      %c100_i32 = arith.constant 100 : i32
      %229 = arith.cmpi slt, %arg10, %c100_i32 : i32
      %true = arith.constant true
      %230 = arith.xori %arg14, %true : i1
      %231 = arith.andi %229, %230 : i1
      scf.condition(%231) %arg10, %arg11, %arg12, %arg13, %arg14 : i32, vector<8x3xf32>, vector<8x1xf32>, vector<1x256xi32>, i1
    } do {
    ^bb0(%arg10: i32, %arg11: vector<8x3xf32>, %arg12: vector<8x1xf32>, %arg13: vector<1x256xi32>, %arg14: i1):
      %cst_89 = arith.constant 2.000000e+00 : f32
      %229 = vector.broadcast %cst_89 : f32 to vector<8x3xf32>
      %230 = arith.mulf %229, %arg11 : vector<8x3xf32>
      %231 = arith.mulf %arg11, %arg11 : vector<8x3xf32>
      %cst_90 = arith.constant dense<0.000000e+00> : vector<8xf32>
      %232 = vector.multi_reduction <add>, %231, %cst_90 [1] : vector<8x3xf32> to vector<8xf32>
      %233 = vector.shape_cast %232 : vector<8xf32> to vector<8x1xf32>
      %234 = vector.extract_strided_slice %230 {offsets = [0, 0], sizes = [8, 1], strides = [1, 1]} : vector<8x3xf32> to vector<8x1xf32>
      %235 = vector.extract_strided_slice %6 {offsets = [0, 0], sizes = [1, 256], strides = [1, 1]} : vector<4x256xf32> to vector<1x256xf32>
      %236 = vector.broadcast %234 : vector<8x1xf32> to vector<8x256xf32>
      %237 = vector.broadcast %235 : vector<1x256xf32> to vector<8x256xf32>
      %238 = arith.mulf %236, %237 : vector<8x256xf32>
      %239 = vector.extract_strided_slice %230 {offsets = [0, 1], sizes = [8, 1], strides = [1, 1]} : vector<8x3xf32> to vector<8x1xf32>
      %240 = vector.extract_strided_slice %6 {offsets = [1, 0], sizes = [1, 256], strides = [1, 1]} : vector<4x256xf32> to vector<1x256xf32>
      %241 = vector.broadcast %239 : vector<8x1xf32> to vector<8x256xf32>
      %242 = vector.broadcast %240 : vector<1x256xf32> to vector<8x256xf32>
      %243 = arith.mulf %241, %242 : vector<8x256xf32>
      %244 = arith.addf %238, %243 : vector<8x256xf32>
      %245 = vector.extract_strided_slice %230 {offsets = [0, 2], sizes = [8, 1], strides = [1, 1]} : vector<8x3xf32> to vector<8x1xf32>
      %246 = vector.extract_strided_slice %6 {offsets = [2, 0], sizes = [1, 256], strides = [1, 1]} : vector<4x256xf32> to vector<1x256xf32>
      %247 = vector.broadcast %245 : vector<8x1xf32> to vector<8x256xf32>
      %248 = vector.broadcast %246 : vector<1x256xf32> to vector<8x256xf32>
      %249 = arith.mulf %247, %248 : vector<8x256xf32>
      %250 = arith.addf %244, %249 : vector<8x256xf32>
      %251 = vector.broadcast %233 : vector<8x1xf32> to vector<8x256xf32>
      %252 = arith.subf %250, %251 : vector<8x256xf32>
      %253 = tpu.bitcast %252 : vector<8x256xf32> -> vector<8x256xi32>
      %c0_i32_91 = arith.constant 0 : i32
      %254 = vector.broadcast %c0_i32_91 : i32 to vector<8x256xi32>
      %255 = arith.cmpi sge, %253, %254 : vector<8x256xi32>
      %c-2147483648_i32_92 = arith.constant -2147483648 : i32
      %256 = vector.broadcast %c-2147483648_i32_92 : i32 to vector<8x256xi32>
      %257 = arith.subi %256, %253 : vector<8x256xi32>
      %258 = arith.select %255, %253, %257 : vector<8x256xi1>, vector<8x256xi32>
      %c-8_i32 = arith.constant -8 : i32
      %259 = vector.broadcast %c-8_i32 : i32 to vector<8x256xi32>
      %260 = arith.andi %258, %259 : vector<8x256xi32>
      %261 = vector.broadcast %9 : vector<8x1xi32> to vector<8x256xi32>
      %262 = arith.ori %260, %261 : vector<8x256xi32>
      %cst_93 = arith.constant dense<-2147483648> : vector<256xi32>
      %263 = vector.multi_reduction <maxsi>, %262, %cst_93 [0] : vector<8x256xi32> to vector<256xi32>
      %264 = vector.shape_cast %263 : vector<256xi32> to vector<1x256xi32>
      %c7_i32_94 = arith.constant 7 : i32
      %265 = vector.broadcast %c7_i32_94 : i32 to vector<1x256xi32>
      %266 = arith.andi %264, %265 : vector<1x256xi32>
      %c7_i32_95 = arith.constant 7 : i32
      %267 = vector.broadcast %c7_i32_95 : i32 to vector<1x256xi32>
      %268 = arith.subi %267, %266 : vector<1x256xi32>
      %269 = vector.broadcast %268 : vector<1x256xi32> to vector<8x256xi32>
      %270 = vector.broadcast %7 : vector<8x1xi32> to vector<8x256xi32>
      %271 = arith.cmpi eq, %269, %270 : vector<8x256xi32>
      %272 = arith.extui %271 : vector<8x256xi1> to vector<8x256xi32>
      %273 = arith.sitofp %272 : vector<8x256xi32> to vector<8x256xf32>
      "tpu.trace_start"() <{level = 10 : i32, message = "kn,dn->kd"}> : () -> ()
      %cst_96 = arith.constant dense<0.000000e+00> : vector<8x4xf32>
      %274 = tpu.matmul %273, %6, %cst_96 {dimension_numbers = #tpu.dot_dimension_numbers<[1], [1], [0], [0], [0, 0, 1, 0], [], []>} : vector<8x256xf32>, vector<4x256xf32>, vector<8x4xf32> -> vector<8x4xf32>
      "tpu.trace_stop"() : () -> ()
      %275 = vector.extract_strided_slice %274 {offsets = [0, 3], sizes = [8, 1], strides = [1, 1]} : vector<8x4xf32> to vector<8x1xf32>
      %276 = vector.extract_strided_slice %274 {offsets = [0, 0], sizes = [8, 3], strides = [1, 1]} : vector<8x4xf32> to vector<8x3xf32>
      %cst_97 = arith.constant 9.99999993E-9 : f32
      %277 = vector.broadcast %cst_97 : f32 to vector<8x1xf32>
      %278 = arith.addf %275, %277 : vector<8x1xf32>
      %279 = vector.broadcast %278 : vector<8x1xf32> to vector<8x3xf32>
      %280 = arith.divf %276, %279 : vector<8x3xf32>
      %281 = arith.subf %280, %arg11 : vector<8x3xf32>
      %282 = arith.mulf %281, %281 : vector<8x3xf32>
      %283 = vector.shape_cast %282 : vector<8x3xf32> to vector<1x8x3xf32>
      %cst_98 = arith.constant dense<0.000000e+00> : vector<1xf32>
      %284 = vector.multi_reduction <add>, %283, %cst_98 [1, 2] : vector<1x8x3xf32> to vector<1xf32>
      %285 = vector.shape_cast %284 : vector<1xf32> to vector<1x1x1xf32>
      %286 = vector.extract %285[0, 0, 0] : f32 from vector<1x1x1xf32>
      %cst_99 = arith.constant 9.99999993E-9 : f32
      %287 = vector.broadcast %cst_99 : f32 to vector<8x1xf32>
      %288 = arith.addf %arg12, %287 : vector<8x1xf32>
      %cst_100 = arith.constant 0.899999976 : f32
      %289 = vector.broadcast %cst_100 : f32 to vector<8x1xf32>
      %290 = arith.divf %289, %288 : vector<8x1xf32>
      %cst_101 = arith.constant 1.000000e-01 : f32
      %291 = vector.broadcast %cst_101 : f32 to vector<8x1xf32>
      %292 = arith.addf %290, %291 : vector<8x1xf32>
      %cst_102 = arith.constant 1.000000e+00 : f32
      %293 = vector.broadcast %cst_102 : f32 to vector<8x1xf32>
      %294 = arith.subf %293, %292 : vector<8x1xf32>
      %295 = vector.broadcast %294 : vector<8x1xf32> to vector<8x3xf32>
      %296 = arith.mulf %arg11, %295 : vector<8x3xf32>
      %297 = vector.broadcast %292 : vector<8x1xf32> to vector<8x3xf32>
      %298 = arith.mulf %280, %297 : vector<8x3xf32>
      %299 = arith.addf %296, %298 : vector<8x3xf32>
      %300 = arith.addf %arg12, %275 : vector<8x1xf32>
      %cst_103 = arith.constant 9.99999974E-5 : f32
      %301 = arith.cmpf ole, %286, %cst_103 : f32
      %c1_i32_104 = arith.constant 1 : i32
      %302 = arith.addi %arg10, %c1_i32_104 : i32
      scf.yield %302, %299, %300, %268, %301 : i32, vector<8x3xf32>, vector<8x1xf32>, vector<1x256xi32>, i1
    }
    %c0_i32_8 = arith.constant 0 : i32
    %14 = tpu.assume_multiple %c0_i32_8, 256 : i32
    %c0_i32_9 = arith.constant 0 : i32
    %c0_i32_10 = arith.constant 0 : i32
    %c0_i32_11 = arith.constant 0 : i32
    %15 = tpu.memref_slice %arg2[%arg0, %c0_i32_11, %14] : memref<2x16x256xbf16, #tpu.memory_space<any>> -> memref<1x16x256xbf16, #tpu.memory_space<any>>
    %16 = tpu.memref_squeeze %15 : memref<1x16x256xbf16, #tpu.memory_space<any>> -> memref<16x256xbf16, #tpu.memory_space<any>>
    %c0_i32_12 = arith.constant 0 : i32
    %c0_i32_13 = arith.constant 0 : i32
    %17 = tpu.memref_slice %arg8[%c0_i32_9, %c0_i32_12, %c0_i32_13] : memref<2x16x256xbf16, #tpu.memory_space<vmem>> -> memref<1x16x256xbf16, #tpu.memory_space<vmem>>
    %18 = tpu.memref_squeeze %17 : memref<1x16x256xbf16, #tpu.memory_space<vmem>> -> memref<16x256xbf16, #tpu.memory_space<vmem>>
    %19 = tpu.memref_slice %arg9[%c0_i32_10] : memref<2x!tpu.dma_semaphore, #tpu.memory_space<semaphore_mem>> -> memref<1x!tpu.dma_semaphore, #tpu.memory_space<semaphore_mem>>
    %20 = tpu.memref_squeeze %19 : memref<1x!tpu.dma_semaphore, #tpu.memory_space<semaphore_mem>> -> memref<!tpu.dma_semaphore, #tpu.memory_space<semaphore_mem>>
    tpu.enqueue_dma source(%16 : memref<16x256xbf16, #tpu.memory_space<any>>) target(%18 : memref<16x256xbf16, #tpu.memory_space<vmem>>) target_semaphore(%20 : memref<!tpu.dma_semaphore, #tpu.memory_space<semaphore_mem>>)
    %cst_14 = arith.constant 2.000000e+00 : f32
    %21 = vector.broadcast %cst_14 : f32 to vector<8x3xf32>
    %22 = arith.mulf %21, %13#1 : vector<8x3xf32>
    %23 = arith.mulf %13#1, %13#1 : vector<8x3xf32>
    %cst_15 = arith.constant dense<0.000000e+00> : vector<8xf32>
    %24 = vector.multi_reduction <add>, %23, %cst_15 [1] : vector<8x3xf32> to vector<8xf32>
    %25 = vector.shape_cast %24 : vector<8xf32> to vector<8x1xf32>
    %26 = vector.extract_strided_slice %4 {offsets = [0, 0], sizes = [1, 256], strides = [1, 1]} : vector<3x256xf32> to vector<1x256xf32>
    %27 = vector.extract_strided_slice %4 {offsets = [0, 0], sizes = [1, 256], strides = [1, 1]} : vector<3x256xf32> to vector<1x256xf32>
    %28 = arith.mulf %26, %27 : vector<1x256xf32>
    %29 = vector.extract_strided_slice %4 {offsets = [1, 0], sizes = [1, 256], strides = [1, 1]} : vector<3x256xf32> to vector<1x256xf32>
    %30 = vector.extract_strided_slice %4 {offsets = [1, 0], sizes = [1, 256], strides = [1, 1]} : vector<3x256xf32> to vector<1x256xf32>
    %31 = arith.mulf %29, %30 : vector<1x256xf32>
    %32 = arith.addf %28, %31 : vector<1x256xf32>
    %33 = vector.extract_strided_slice %4 {offsets = [2, 0], sizes = [1, 256], strides = [1, 1]} : vector<3x256xf32> to vector<1x256xf32>
    %34 = vector.extract_strided_slice %4 {offsets = [2, 0], sizes = [1, 256], strides = [1, 1]} : vector<3x256xf32> to vector<1x256xf32>
    %35 = arith.mulf %33, %34 : vector<1x256xf32>
    %36 = arith.addf %32, %35 : vector<1x256xf32>
    %37 = vector.extract_strided_slice %22 {offsets = [0, 0], sizes = [8, 1], strides = [1, 1]} : vector<8x3xf32> to vector<8x1xf32>
    %38 = vector.extract_strided_slice %6 {offsets = [0, 0], sizes = [1, 256], strides = [1, 1]} : vector<4x256xf32> to vector<1x256xf32>
    %39 = vector.broadcast %37 : vector<8x1xf32> to vector<8x256xf32>
    %40 = vector.broadcast %38 : vector<1x256xf32> to vector<8x256xf32>
    %41 = arith.mulf %39, %40 : vector<8x256xf32>
    %42 = vector.extract_strided_slice %22 {offsets = [0, 1], sizes = [8, 1], strides = [1, 1]} : vector<8x3xf32> to vector<8x1xf32>
    %43 = vector.extract_strided_slice %6 {offsets = [1, 0], sizes = [1, 256], strides = [1, 1]} : vector<4x256xf32> to vector<1x256xf32>
    %44 = vector.broadcast %42 : vector<8x1xf32> to vector<8x256xf32>
    %45 = vector.broadcast %43 : vector<1x256xf32> to vector<8x256xf32>
    %46 = arith.mulf %44, %45 : vector<8x256xf32>
    %47 = arith.addf %41, %46 : vector<8x256xf32>
    %48 = vector.extract_strided_slice %22 {offsets = [0, 2], sizes = [8, 1], strides = [1, 1]} : vector<8x3xf32> to vector<8x1xf32>
    %49 = vector.extract_strided_slice %6 {offsets = [2, 0], sizes = [1, 256], strides = [1, 1]} : vector<4x256xf32> to vector<1x256xf32>
    %50 = vector.broadcast %48 : vector<8x1xf32> to vector<8x256xf32>
    %51 = vector.broadcast %49 : vector<1x256xf32> to vector<8x256xf32>
    %52 = arith.mulf %50, %51 : vector<8x256xf32>
    %53 = arith.addf %47, %52 : vector<8x256xf32>
    %54 = vector.broadcast %25 : vector<8x1xf32> to vector<8x256xf32>
    %55 = arith.subf %53, %54 : vector<8x256xf32>
    %56 = vector.broadcast %36 : vector<1x256xf32> to vector<8x256xf32>
    %57 = arith.subf %55, %56 : vector<8x256xf32>
    %58 = vector.broadcast %13#3 : vector<1x256xi32> to vector<8x256xi32>
    %59 = vector.broadcast %7 : vector<8x1xi32> to vector<8x256xi32>
    %60 = arith.cmpi eq, %58, %59 : vector<8x256xi32>
    %61 = tpu.iota {dimensions = array<i32: 1>} : vector<1x256xi32>
    %c255_i32 = arith.constant 255 : i32
    %62 = vector.broadcast %c255_i32 : i32 to vector<1x256xi32>
    %63 = arith.subi %62, %61 : vector<1x256xi32>
    %64 = tpu.bitcast %57 : vector<8x256xf32> -> vector<8x256xi32>
    %c0_i32_16 = arith.constant 0 : i32
    %65 = vector.broadcast %c0_i32_16 : i32 to vector<8x256xi32>
    %66 = arith.cmpi sge, %64, %65 : vector<8x256xi32>
    %c-2147483648_i32 = arith.constant -2147483648 : i32
    %67 = vector.broadcast %c-2147483648_i32 : i32 to vector<8x256xi32>
    %68 = arith.subi %67, %64 : vector<8x256xi32>
    %69 = arith.select %66, %64, %68 : vector<8x256xi1>, vector<8x256xi32>
    %c-256_i32 = arith.constant -256 : i32
    %70 = vector.broadcast %c-256_i32 : i32 to vector<8x256xi32>
    %71 = arith.andi %69, %70 : vector<8x256xi32>
    %72 = vector.broadcast %63 : vector<1x256xi32> to vector<8x256xi32>
    %73 = arith.ori %71, %72 : vector<8x256xi32>
    %c-2147483648_i32_17 = arith.constant -2147483648 : i32
    %74 = vector.broadcast %c-2147483648_i32_17 : i32 to vector<8x256xi32>
    %75 = arith.select %60, %73, %74 : vector<8x256xi1>, vector<8x256xi32>
    %cst_18 = arith.constant dense<-2147483648> : vector<8xi32>
    %76 = vector.multi_reduction <maxsi>, %75, %cst_18 [1] : vector<8x256xi32> to vector<8xi32>
    %77 = vector.shape_cast %76 : vector<8xi32> to vector<8x1xi32>
    %78 = vector.broadcast %77 : vector<8x1xi32> to vector<8x256xi32>
    %79 = arith.cmpi eq, %75, %78 : vector<8x256xi32>
    %c-2147483648_i32_19 = arith.constant -2147483648 : i32
    %80 = vector.broadcast %c-2147483648_i32_19 : i32 to vector<8x256xi32>
    %81 = arith.select %79, %80, %75 : vector<8x256xi1>, vector<8x256xi32>
    %cst_20 = arith.constant dense<-2147483648> : vector<8xi32>
    %82 = vector.multi_reduction <maxsi>, %81, %cst_20 [1] : vector<8x256xi32> to vector<8xi32>
    %83 = vector.shape_cast %82 : vector<8xi32> to vector<8x1xi32>
    %84 = vector.broadcast %83 : vector<8x1xi32> to vector<8x256xi32>
    %85 = arith.cmpi eq, %81, %84 : vector<8x256xi32>
    %c-2147483648_i32_21 = arith.constant -2147483648 : i32
    %86 = vector.broadcast %c-2147483648_i32_21 : i32 to vector<8x256xi32>
    %87 = arith.select %85, %86, %81 : vector<8x256xi1>, vector<8x256xi32>
    %cst_22 = arith.constant dense<-2147483648> : vector<8xi32>
    %88 = vector.multi_reduction <maxsi>, %87, %cst_22 [1] : vector<8x256xi32> to vector<8xi32>
    %89 = vector.shape_cast %88 : vector<8xi32> to vector<8x1xi32>
    %90 = vector.broadcast %89 : vector<8x1xi32> to vector<8x256xi32>
    %91 = arith.cmpi eq, %87, %90 : vector<8x256xi32>
    %c-2147483648_i32_23 = arith.constant -2147483648 : i32
    %92 = vector.broadcast %c-2147483648_i32_23 : i32 to vector<8x256xi32>
    %93 = arith.select %91, %92, %87 : vector<8x256xi1>, vector<8x256xi32>
    %cst_24 = arith.constant dense<-2147483648> : vector<8xi32>
    %94 = vector.multi_reduction <maxsi>, %93, %cst_24 [1] : vector<8x256xi32> to vector<8xi32>
    %95 = vector.shape_cast %94 : vector<8xi32> to vector<8x1xi32>
    %96 = vector.broadcast %95 : vector<8x1xi32> to vector<8x256xi32>
    %97 = arith.cmpi eq, %93, %96 : vector<8x256xi32>
    %c-2147483648_i32_25 = arith.constant -2147483648 : i32
    %98 = vector.broadcast %c-2147483648_i32_25 : i32 to vector<8x256xi32>
    %99 = arith.select %97, %98, %93 : vector<8x256xi1>, vector<8x256xi32>
    %cst_26 = arith.constant dense<-2147483648> : vector<8xi32>
    %100 = vector.multi_reduction <maxsi>, %99, %cst_26 [1] : vector<8x256xi32> to vector<8xi32>
    %101 = vector.shape_cast %100 : vector<8xi32> to vector<8x1xi32>
    %102 = vector.broadcast %101 : vector<8x1xi32> to vector<8x256xi32>
    %103 = arith.cmpi eq, %99, %102 : vector<8x256xi32>
    %c-2147483648_i32_27 = arith.constant -2147483648 : i32
    %104 = vector.broadcast %c-2147483648_i32_27 : i32 to vector<8x256xi32>
    %105 = arith.select %103, %104, %99 : vector<8x256xi1>, vector<8x256xi32>
    %cst_28 = arith.constant dense<-2147483648> : vector<8xi32>
    %106 = vector.multi_reduction <maxsi>, %105, %cst_28 [1] : vector<8x256xi32> to vector<8xi32>
    %107 = vector.shape_cast %106 : vector<8xi32> to vector<8x1xi32>
    %108 = vector.broadcast %107 : vector<8x1xi32> to vector<8x256xi32>
    %109 = arith.cmpi eq, %105, %108 : vector<8x256xi32>
    %c-2147483648_i32_29 = arith.constant -2147483648 : i32
    %110 = vector.broadcast %c-2147483648_i32_29 : i32 to vector<8x256xi32>
    %111 = arith.select %109, %110, %105 : vector<8x256xi1>, vector<8x256xi32>
    %cst_30 = arith.constant dense<-2147483648> : vector<8xi32>
    %112 = vector.multi_reduction <maxsi>, %111, %cst_30 [1] : vector<8x256xi32> to vector<8xi32>
    %113 = vector.shape_cast %112 : vector<8xi32> to vector<8x1xi32>
    %114 = vector.broadcast %113 : vector<8x1xi32> to vector<8x256xi32>
    %115 = arith.cmpi eq, %111, %114 : vector<8x256xi32>
    %c-2147483648_i32_31 = arith.constant -2147483648 : i32
    %116 = vector.broadcast %c-2147483648_i32_31 : i32 to vector<8x256xi32>
    %117 = arith.select %115, %116, %111 : vector<8x256xi1>, vector<8x256xi32>
    %cst_32 = arith.constant dense<-2147483648> : vector<8xi32>
    %118 = vector.multi_reduction <maxsi>, %117, %cst_32 [1] : vector<8x256xi32> to vector<8xi32>
    %119 = vector.shape_cast %118 : vector<8xi32> to vector<8x1xi32>
    %120 = vector.broadcast %119 : vector<8x1xi32> to vector<8x256xi32>
    %121 = arith.cmpi eq, %117, %120 : vector<8x256xi32>
    %c-2147483648_i32_33 = arith.constant -2147483648 : i32
    %122 = vector.broadcast %c-2147483648_i32_33 : i32 to vector<8x256xi32>
    %123 = arith.select %121, %122, %117 : vector<8x256xi1>, vector<8x256xi32>
    %cst_34 = arith.constant dense<-2147483648> : vector<8xi32>
    %124 = vector.multi_reduction <maxsi>, %123, %cst_34 [1] : vector<8x256xi32> to vector<8xi32>
    %125 = vector.shape_cast %124 : vector<8xi32> to vector<8x1xi32>
    %126 = vector.broadcast %125 : vector<8x1xi32> to vector<8x256xi32>
    %127 = arith.cmpi eq, %123, %126 : vector<8x256xi32>
    %c-2147483648_i32_35 = arith.constant -2147483648 : i32
    %128 = vector.broadcast %c-2147483648_i32_35 : i32 to vector<8x256xi32>
    %129 = arith.select %127, %128, %123 : vector<8x256xi1>, vector<8x256xi32>
    %cst_36 = arith.constant dense<-2147483648> : vector<8xi32>
    %130 = vector.multi_reduction <maxsi>, %129, %cst_36 [1] : vector<8x256xi32> to vector<8xi32>
    %131 = vector.shape_cast %130 : vector<8xi32> to vector<8x1xi32>
    %132 = vector.broadcast %131 : vector<8x1xi32> to vector<8x256xi32>
    %133 = arith.cmpi eq, %129, %132 : vector<8x256xi32>
    %c-2147483648_i32_37 = arith.constant -2147483648 : i32
    %134 = vector.broadcast %c-2147483648_i32_37 : i32 to vector<8x256xi32>
    %135 = arith.select %133, %134, %129 : vector<8x256xi1>, vector<8x256xi32>
    %cst_38 = arith.constant dense<-2147483648> : vector<8xi32>
    %136 = vector.multi_reduction <maxsi>, %135, %cst_38 [1] : vector<8x256xi32> to vector<8xi32>
    %137 = vector.shape_cast %136 : vector<8xi32> to vector<8x1xi32>
    %138 = vector.broadcast %137 : vector<8x1xi32> to vector<8x256xi32>
    %139 = arith.cmpi eq, %135, %138 : vector<8x256xi32>
    %c-2147483648_i32_39 = arith.constant -2147483648 : i32
    %140 = vector.broadcast %c-2147483648_i32_39 : i32 to vector<8x256xi32>
    %141 = arith.select %139, %140, %135 : vector<8x256xi1>, vector<8x256xi32>
    %cst_40 = arith.constant dense<-2147483648> : vector<8xi32>
    %142 = vector.multi_reduction <maxsi>, %141, %cst_40 [1] : vector<8x256xi32> to vector<8xi32>
    %143 = vector.shape_cast %142 : vector<8xi32> to vector<8x1xi32>
    %144 = vector.broadcast %143 : vector<8x1xi32> to vector<8x256xi32>
    %145 = arith.cmpi eq, %141, %144 : vector<8x256xi32>
    %c-2147483648_i32_41 = arith.constant -2147483648 : i32
    %146 = vector.broadcast %c-2147483648_i32_41 : i32 to vector<8x256xi32>
    %147 = arith.select %145, %146, %141 : vector<8x256xi1>, vector<8x256xi32>
    %cst_42 = arith.constant dense<-2147483648> : vector<8xi32>
    %148 = vector.multi_reduction <maxsi>, %147, %cst_42 [1] : vector<8x256xi32> to vector<8xi32>
    %149 = vector.shape_cast %148 : vector<8xi32> to vector<8x1xi32>
    %150 = vector.broadcast %149 : vector<8x1xi32> to vector<8x256xi32>
    %151 = arith.cmpi eq, %147, %150 : vector<8x256xi32>
    %c-2147483648_i32_43 = arith.constant -2147483648 : i32
    %152 = vector.broadcast %c-2147483648_i32_43 : i32 to vector<8x256xi32>
    %153 = arith.select %151, %152, %147 : vector<8x256xi1>, vector<8x256xi32>
    %cst_44 = arith.constant dense<-2147483648> : vector<8xi32>
    %154 = vector.multi_reduction <maxsi>, %153, %cst_44 [1] : vector<8x256xi32> to vector<8xi32>
    %155 = vector.shape_cast %154 : vector<8xi32> to vector<8x1xi32>
    %156 = vector.broadcast %155 : vector<8x1xi32> to vector<8x256xi32>
    %157 = arith.cmpi eq, %153, %156 : vector<8x256xi32>
    %c-2147483648_i32_45 = arith.constant -2147483648 : i32
    %158 = vector.broadcast %c-2147483648_i32_45 : i32 to vector<8x256xi32>
    %159 = arith.select %157, %158, %153 : vector<8x256xi1>, vector<8x256xi32>
    %cst_46 = arith.constant dense<-2147483648> : vector<8xi32>
    %160 = vector.multi_reduction <maxsi>, %159, %cst_46 [1] : vector<8x256xi32> to vector<8xi32>
    %161 = vector.shape_cast %160 : vector<8xi32> to vector<8x1xi32>
    %162 = vector.broadcast %161 : vector<8x1xi32> to vector<8x256xi32>
    %163 = arith.cmpi eq, %159, %162 : vector<8x256xi32>
    %c-2147483648_i32_47 = arith.constant -2147483648 : i32
    %164 = vector.broadcast %c-2147483648_i32_47 : i32 to vector<8x256xi32>
    %165 = arith.select %163, %164, %159 : vector<8x256xi1>, vector<8x256xi32>
    %c-2147483648_i32_48 = arith.constant -2147483648 : i32
    %166 = vector.broadcast %c-2147483648_i32_48 : i32 to vector<8x256xi32>
    %167 = arith.cmpi eq, %165, %166 : vector<8x256xi32>
    %168 = arith.andi %60, %167 : vector<8x256xi1>
    %cst_49 = arith.constant -1.000000e+30 : f32
    %169 = vector.broadcast %cst_49 : f32 to vector<8x256xf32>
    %170 = arith.select %60, %57, %169 : vector<8x256xi1>, vector<8x256xf32>
    %cst_50 = arith.constant dense<0xFF800000> : vector<8xf32>
    %171 = vector.multi_reduction <maximumf>, %170, %cst_50 [1] : vector<8x256xf32> to vector<8xf32>
    %172 = vector.shape_cast %171 : vector<8xf32> to vector<8x1xf32>
    %cst_51 = arith.constant -5.000000e+29 : f32
    %173 = vector.broadcast %cst_51 : f32 to vector<8x1xf32>
    %174 = arith.cmpf ogt, %172, %173 : vector<8x1xf32>
    %cst_52 = arith.constant 0.000000e+00 : f32
    %175 = vector.broadcast %cst_52 : f32 to vector<8x1xf32>
    %176 = arith.select %174, %172, %175 : vector<8x1xi1>, vector<8x1xf32>
    %cst_53 = arith.constant -1.000000e+30 : f32
    %177 = vector.broadcast %cst_53 : f32 to vector<8x256xf32>
    %178 = arith.select %168, %57, %177 : vector<8x256xi1>, vector<8x256xf32>
    %179 = vector.broadcast %176 : vector<8x1xf32> to vector<8x256xf32>
    %180 = arith.subf %178, %179 : vector<8x256xf32>
    %181 = math.exp %180 : vector<8x256xf32>
    %cst_54 = arith.constant dense<0.000000e+00> : vector<8xf32>
    %182 = vector.multi_reduction <add>, %181, %cst_54 [1] : vector<8x256xf32> to vector<8xf32>
    %183 = vector.shape_cast %182 : vector<8xf32> to vector<8x1xf32>
    %cst_55 = arith.constant 1.000000e-30 : f32
    %184 = vector.broadcast %cst_55 : f32 to vector<8x1xf32>
    %185 = arith.maximumf %183, %184 : vector<8x1xf32>
    %cst_56 = arith.constant 1.000000e+00 : f32
    %186 = vector.broadcast %cst_56 : f32 to vector<8x1xf32>
    %187 = arith.divf %186, %185 : vector<8x1xf32>
    %188 = vector.broadcast %187 : vector<8x1xf32> to vector<8x256xf32>
    %189 = arith.mulf %181, %188 : vector<8x256xf32>
    %190 = arith.truncf %189 : vector<8x256xf32> to vector<8x256xbf16>
    %c0_57 = arith.constant 0 : index
    %c0_58 = arith.constant 0 : index
    %191 = vector.load %arg7[%c0_57, %c0_58] : memref<8x256xbf16, #tpu.memory_space<vmem>>, vector<8x256xbf16>
    tpu.vector_store %arg7[%c0_57, %c0_58], %190 {strides = array<i32>} : memref<8x256xbf16, #tpu.memory_space<vmem>>, vector<8x256xbf16>,
    %c0_59 = arith.constant 0 : index
    %c0_60 = arith.constant 0 : index
    %192 = vector.load %arg6[%c0_59, %c0_60] : memref<8x3xf32, #tpu.memory_space<vmem>>, vector<8x3xf32>
    tpu.vector_store %arg6[%c0_59, %c0_60], %13#1 {strides = array<i32>} : memref<8x3xf32, #tpu.memory_space<vmem>>, vector<8x3xf32>,
    %c0_61 = arith.constant 0 : index
    %c0_62 = arith.constant 0 : index
    %c0_63 = arith.constant 0 : index
    %193 = vector.load %arg4[%c0_61, %c0_62, %c0_63] : memref<1x8x3xf32, #tpu.memory_space<vmem>>, vector<1x8x3xf32>
    %194 = vector.shape_cast %193 : vector<1x8x3xf32> to vector<8x3xf32>
    %195 = vector.shape_cast %13#1 : vector<8x3xf32> to vector<1x8x3xf32>
    tpu.vector_store %arg4[%c0_61, %c0_62, %c0_63], %195 {strides = array<i32>} : memref<1x8x3xf32, #tpu.memory_space<vmem>>, vector<1x8x3xf32>,
    %cst_64 = arith.constant 0.000000e+00 : f32
    %196 = vector.broadcast %cst_64 : f32 to vector<8x16xf32>
    %c0_65 = arith.constant 0 : index
    %c0_66 = arith.constant 0 : index
    %c0_67 = arith.constant 0 : index
    %197 = vector.load %arg5[%c0_65, %c0_66, %c0_67] : memref<1x8x16xf32, #tpu.memory_space<vmem>>, vector<1x8x16xf32>
    %198 = vector.shape_cast %197 : vector<1x8x16xf32> to vector<8x16xf32>
    %199 = vector.shape_cast %196 : vector<8x16xf32> to vector<1x8x16xf32>
    tpu.vector_store %arg5[%c0_65, %c0_66, %c0_67], %199 {strides = array<i32>} : memref<1x8x16xf32, #tpu.memory_space<vmem>>, vector<1x8x16xf32>,
    %c0_i32_68 = arith.constant 0 : i32
    %c1_i32 = arith.constant 1 : i32
    %200 = arith.muli %c0_i32_68, %c1_i32 : i32
    %c0_i32_69 = arith.constant 0 : i32
    %201 = arith.addi %c0_i32_69, %200 : i32
    %c1_i32_70 = arith.constant 1 : i32
    %202 = arith.andi %201, %c1_i32_70 : i32
    %c256_i32 = arith.constant 256 : i32
    %203 = arith.muli %201, %c256_i32 : i32
    %204 = tpu.assume_multiple %203, 256 : i32
    %c0_i32_71 = arith.constant 0 : i32
    %205 = tpu.memref_slice %arg2[%arg0, %c0_i32_71, %204] : memref<2x16x256xbf16, #tpu.memory_space<any>> -> memref<1x16x256xbf16, #tpu.memory_space<any>>
    %206 = tpu.memref_squeeze %205 : memref<1x16x256xbf16, #tpu.memory_space<any>> -> memref<16x256xbf16, #tpu.memory_space<any>>
    %c0_i32_72 = arith.constant 0 : i32
    %c0_i32_73 = arith.constant 0 : i32
    %207 = tpu.memref_slice %arg8[%202, %c0_i32_72, %c0_i32_73] : memref<2x16x256xbf16, #tpu.memory_space<vmem>> -> memref<1x16x256xbf16, #tpu.memory_space<vmem>>
    %208 = tpu.memref_squeeze %207 : memref<1x16x256xbf16, #tpu.memory_space<vmem>> -> memref<16x256xbf16, #tpu.memory_space<vmem>>
    %209 = tpu.memref_slice %arg9[%202] : memref<2x!tpu.dma_semaphore, #tpu.memory_space<semaphore_mem>> -> memref<1x!tpu.dma_semaphore, #tpu.memory_space<semaphore_mem>>
    %210 = tpu.memref_squeeze %209 : memref<1x!tpu.dma_semaphore, #tpu.memory_space<semaphore_mem>> -> memref<!tpu.dma_semaphore, #tpu.memory_space<semaphore_mem>>
    tpu.wait_dma2 semaphore(%210 : memref<!tpu.dma_semaphore, #tpu.memory_space<semaphore_mem>>) src(%206 : memref<16x256xbf16, #tpu.memory_space<any>>) dst(%208 : memref<16x256xbf16, #tpu.memory_space<vmem>>)
    %c1_i32_74 = arith.constant 1 : i32
    %211 = arith.addi %201, %c1_i32_74 : i32
    %c1_i32_75 = arith.constant 1 : i32
    %212 = arith.cmpi slt, %211, %c1_i32_75 : i32
    %213 = arith.extui %212 : i1 to i32
    %c0_i32_76 = arith.constant 0 : i32
    %214 = arith.cmpi ne, %213, %c0_i32_76 : i32
    scf.if %214 {
      %c1_i32_89 = arith.constant 1 : i32
      %229 = arith.addi %201, %c1_i32_89 : i32
      %c1_i32_90 = arith.constant 1 : i32
      %230 = arith.subi %c1_i32_90, %202 : i32
      %c256_i32_91 = arith.constant 256 : i32
      %231 = arith.muli %229, %c256_i32_91 : i32
      %232 = tpu.assume_multiple %231, 256 : i32
      %c0_i32_92 = arith.constant 0 : i32
      %233 = tpu.memref_slice %arg2[%arg0, %c0_i32_92, %232] : memref<2x16x256xbf16, #tpu.memory_space<any>> -> memref<1x16x256xbf16, #tpu.memory_space<any>>
      %234 = tpu.memref_squeeze %233 : memref<1x16x256xbf16, #tpu.memory_space<any>> -> memref<16x256xbf16, #tpu.memory_space<any>>
      %c0_i32_93 = arith.constant 0 : i32
      %c0_i32_94 = arith.constant 0 : i32
      %235 = tpu.memref_slice %arg8[%230, %c0_i32_93, %c0_i32_94] : memref<2x16x256xbf16, #tpu.memory_space<vmem>> -> memref<1x16x256xbf16, #tpu.memory_space<vmem>>
      %236 = tpu.memref_squeeze %235 : memref<1x16x256xbf16, #tpu.memory_space<vmem>> -> memref<16x256xbf16, #tpu.memory_space<vmem>>
      %237 = tpu.memref_slice %arg9[%230] : memref<2x!tpu.dma_semaphore, #tpu.memory_space<semaphore_mem>> -> memref<1x!tpu.dma_semaphore, #tpu.memory_space<semaphore_mem>>
      %238 = tpu.memref_squeeze %237 : memref<1x!tpu.dma_semaphore, #tpu.memory_space<semaphore_mem>> -> memref<!tpu.dma_semaphore, #tpu.memory_space<semaphore_mem>>
      tpu.enqueue_dma source(%234 : memref<16x256xbf16, #tpu.memory_space<any>>) target(%236 : memref<16x256xbf16, #tpu.memory_space<vmem>>) target_semaphore(%238 : memref<!tpu.dma_semaphore, #tpu.memory_space<semaphore_mem>>)
    } else {
    }
    %c256_i32_77 = arith.constant 256 : i32
    %215 = arith.muli %201, %c256_i32_77 : i32
    %216 = tpu.assume_multiple %215, 256 : i32
    %c0_78 = arith.constant 0 : index
    %217 = arith.index_cast %216 : i32 to index
    %218 = vector.load %arg7[%c0_78, %217] : memref<8x256xbf16, #tpu.memory_space<vmem>>, vector<8x256xbf16>
    %c0_79 = arith.constant 0 : index
    %c0_80 = arith.constant 0 : index
    %c0_81 = arith.constant 0 : index
    %219 = vector.load %arg5[%c0_79, %c0_80, %c0_81] : memref<1x8x16xf32, #tpu.memory_space<vmem>>, vector<1x8x16xf32>
    %220 = vector.shape_cast %219 : vector<1x8x16xf32> to vector<8x16xf32>
    %221 = arith.index_cast %202 : i32 to index
    %c0_82 = arith.constant 0 : index
    %c0_83 = arith.constant 0 : index
    %222 = vector.load %arg8[%221, %c0_82, %c0_83] : memref<2x16x256xbf16, #tpu.memory_space<vmem>>, vector<1x16x256xbf16>
    %223 = vector.shape_cast %222 : vector<1x16x256xbf16> to vector<16x256xbf16>
    "tpu.trace_start"() <{level = 10 : i32, message = "kn,fn->kf"}> : () -> ()
    %cst_84 = arith.constant dense<0.000000e+00> : vector<8x16xf32>
    %224 = tpu.matmul %218, %223, %cst_84 {dimension_numbers = #tpu.dot_dimension_numbers<[1], [1], [0], [0], [0, 0, 1, 0], [], []>} : vector<8x256xbf16>, vector<16x256xbf16>, vector<8x16xf32> -> vector<8x16xf32>
    "tpu.trace_stop"() : () -> ()
    %225 = arith.addf %220, %224 : vector<8x16xf32>
    %c0_85 = arith.constant 0 : index
    %c0_86 = arith.constant 0 : index
    %c0_87 = arith.constant 0 : index
    %226 = vector.load %arg5[%c0_85, %c0_86, %c0_87] : memref<1x8x16xf32, #tpu.memory_space<vmem>>, vector<1x8x16xf32>
    %227 = vector.shape_cast %226 : vector<1x8x16xf32> to vector<8x16xf32>
    %228 = vector.shape_cast %225 : vector<8x16xf32> to vector<1x8x16xf32>
    tpu.vector_store %arg5[%c0_85, %c0_86, %c0_87], %228 {strides = array<i32>} : memref<1x8x16xf32, #tpu.memory_space<vmem>>, vector<1x8x16xf32>,
    %c1_i32_88 = arith.constant 1 : i32
    return
  }
  func.func @transform_0(%arg0: i32) -> (i32, i32, i32) {
    %c0_i32 = arith.constant 0 : i32
    %c0_i32_0 = arith.constant 0 : i32
    %c0_i32_1 = arith.constant 0 : i32
    return %arg0, %c0_i32, %c0_i32_0 : i32, i32, i32
  }
  func.func @transform_2(%arg0: i32) -> (i32, i32) {
    %c0_i32 = arith.constant 0 : i32
    %c0_i32_0 = arith.constant 0 : i32
    %c0_i32_1 = arith.constant 0 : i32
    return %c0_i32, %c0_i32_0 : i32, i32
  }
  func.func @transform_3(%arg0: i32) -> (i32, i32, i32) {
    %c0_i32 = arith.constant 0 : i32
    %c0_i32_0 = arith.constant 0 : i32
    %c0_i32_1 = arith.constant 0 : i32
    return %arg0, %c0_i32, %c0_i32_0 : i32, i32, i32
  }
  func.func @transform_4(%arg0: i32) -> (i32, i32, i32) {
    %c0_i32 = arith.constant 0 : i32
    %c0_i32_0 = arith.constant 0 : i32
    %c0_i32_1 = arith.constant 0 : i32
    return %arg0, %c0_i32, %c0_i32_0 : i32, i32, i32
  }
}

</mosaic_0001>

<bundles_post_ra>
// kernel: kmeans_forward.1
= control target key start
LH: loop header
LB: loop body
LE: loop exit
PB: predicated region body
PF: predicated region fallthrough
CT: control target
= control target key end

     0   :  { %10 = vsyncpa [#allocation7], 0  ;;  %s1656_s0 = inlined_call_operand.vmem [shape: f32[2,3,256], index: 0, kind: input, shape index: {}]   ;;  %s1657_s1 = inlined_call_operand.vmem [shape: bf16[2,16,256], index: 1, kind: input, shape index: {}]   ;;  %s1658_s2 = inlined_call_operand.vmem [shape: f32[8,3], index: 2, kind: input, shape index: {}]   ;;  %s1659_s3 = inlined_call_operand.vmem [shape: f32[2,8,3], index: 3, kind: output, shape index: {0}]   ;;  %s1660_s4 = inlined_call_operand.hbm [shape: f32[2,8,16], index: 4, kind: output, shape index: {1}]  }
   0x1   :  { %12 = vsyncpa [#allocation7 + $0x1], 0  ;;  %s1380_s15 = smov 0   ;;  %s1382_s16 = smov 0  }
   0x2   :  { %s1384_s17 = smov 0   ;;  %s1386_s18 = smov 0  }
   0x3 LB: > { %s1401_s19 = sadd.s32 4294967295, %s1331_s18   ;;  %s1130_s20 = sadd.s32 4294967294, %s1331_s18   ;;  %s1331_s18 = sphi %s1386_s18, %s1668_s18   ;;  %s1327_s17 = sphi %s1384_s17, %s1667_s17   ;;  %s1323_s16 = sphi %s1382_s16, %s1666_s16   ;;  %s1319_s15 = sphi %s1380_s15, %s1665_s15  }
   0x4   : > { %s1405_s21 = sadd.s32 1, %s1331_s18   ;;  %s98_s22 = sadd.s32 1, %s1327_s17 }
   0x5   : > { %s95_s23 = ssub.s32 %s1331_s18, %s1405_s21  ;;  %p108_p0 = scmp.ne.s32.totalorder %s1327_s17, %s1323_s16 }
   0x6   : > { %p96_p1 = scmp.eq.s32.totalorder %s95_s23, 0  ;;  %p109_p2 = scmp.eq.s32.totalorder %s1401_s19, 1 }
   0x7   : > { %p114_p3 = scmp.ne.s32.totalorder %s1323_s16, %s1319_s15  ;;  %p115_p4 = scmp.eq.s32.totalorder %s1130_s20, 1 }
   0x8   : > { %s1416_s24 = scalar_select %p96_p1, %s1327_s17, %s98_s22  }
   0x9   : > { %p1418_p5 = por %p109_p2, %p108_p0  ;;  %p1422_p6 = por %p115_p4, %p114_p3 }
   0xa   : > { %p1133_p7 = scmp.ge.s32.totalorder %s1331_s18, 1  ;;  %p144_p8 = scmp.lt.s32.totalorder %s1331_s18, 3 }
   0xc   : > { %p145_p9 = pnand %p1133_p7, %p144_p8 }
   0xd   : > { %s169_s27 = sand.u32 (!%p145_p9), 1, %s1323_s16   ;;  %p172_p10 = scmp.lt.s32.totalorder (!%p145_p9), %s1401_s19, 1 }
   0xe   : > { %148 = sbr.rel (%p145_p9) target bundleno = 5682 (0x1632), region = 28  ;;  %s1134_s28 = sshll.u32 (!%p145_p9), %s169_s27, 3 }
   0xf   : > { %s1441_s11 = scalar_lea.vmem (!%p145_p9), [#allocation6], %s1134_s28  ;;  %p1138_p11 = scmp.ne.s32.totalorder (!%p145_p9), %s1401_s19, 0 }
  0x13   : > { %s173_s29 = scalar_select %p172_p10, %s1401_s19, 1 }
  0x14   : > { %185 = sbr.rel (%p1138_p11) target bundleno = 27 (0x1b), region = 32 }
  0x15   : > { %s1158_s30 = sshll.u32 %s173_s29, 3 }
  0x16   : > { %s176_s7 = scalar_lea.vmem %s1656_s0, %s1158_s30  ;;  %s1439_s10 = scalar_lea.vmem %s1659_s3, %s1158_s30 }
  0x19   : > { %v186_v0 = vld [vmem:[%s1658_s2] sm:$0xff]  ;;  %vm187_vm0 = vcmask 23552  }
  0x1a   : > { %188 = vst.msk [vmem:[#allocation2] sm:$0xff] %vm187_vm0, %v186_v0 }
  0x1b PF: > { %v1447_v1 = vld [vmem:[%s176_s7] sm:$0x77]  ;;  %vm193_vm1 = vcmask 1042432   ;;  %v196_v2 = vlaneseq  ;;  %v1460_v9 = vmov 1.0   ;;  %s1464_s14 = smov 0  }
  0x1c   : > { %v191_v4 = vcombine.high %v1447_v1, %v1447_v1  ;;  %v1452_v5 = vsel %vm193_vm1, %v1447_v1, 1.0 }
  0x1d   : > { %v1455_v6 = vshrl.u32 %v196_v2, 7 }
  0x1e   : > { %v1457_v7 = vsel %vm193_vm1, %v191_v4, 1.0 }
  0x1f   : > { %v198_v8 = vsub.s32 7, %v1455_v6 }
  0x21   : > { %v199_v3 = vld [vmem:[#allocation2] sm:$0xff]  }
  0x22 LB: >> { %338 = vmatprep.subr.mxu0 %v1457_v7  ;;  %vm215_vm2 = vcmask 23552   ;;  %v1345_v10 = vmov 1   ;;  %v1346_v11 = vmov 0   ;;  %v214_v12 = vmul.f32 %v1339_v3, %v1339_v3  ;;  %s418_s14 = sadd.s32 1, %s1343_s14   ;;  %s1343_s14 = sphi %s1464_s14, %s418_s14   ;;  %v1339_v3 = vphi %v199_v3, %v1664_v3   ;;  %v1335_v9 = vphi %v1460_v9, %v1663_v9  }
  0x23   : >> { %1239 = vset.pattern.permute.xlu1 %v1345_v10  ;;  %1238 = vset.pattern.permute.xlu0 %v1346_v11  ;;  %v213_v13 = vmul.f32 2.0, %v1339_v3  ;;  %v1347_v15 = vmov 2   ;;  %v240_v16 = vsub.s32 1, %v1455_v6  ;;  %v1483_v18 = vsub.s32 0, %v1455_v6  ;;  %p207_p13 = scmp.lt.s32.totalorder %s418_s14, 100 }
  0x24   : >> { %339 = vmatpush1.xpose.msra.mxu0 %v1452_v5  ;;  %v216_v14 = vsel %vm215_vm2, %v214_v12, 0.0  ;;  %v256_v19 = vsub.s32 2, %v1455_v6  ;;  %v1348_v4 = vmov 1.0   ;;  %v1349_v10 = vmov 3  }
  0x25   : >> { %235 = vperm.xlu1 %1239, %v213_v13   ;;  %217 = vadd.xlane.f32.xlu0 %v216_v14  ;;  %v1487_v21 = vrot.slane %v1452_v5, %v240_v16  ;;  %v1490_v22 = vrot.slane %v1457_v7, %v240_v16  ;;  %v1494_v23 = vrot.slane %v1452_v5, %v1483_v18 }
  0x26   : >> { %v1498_v24 = vrot.slane %v1457_v7, %v1483_v18  ;;  %v1501_v25 = vrot.slane %v1452_v5, %v256_v19  ;;  %v1504_v26 = vrot.slane %v1457_v7, %v256_v19 }
  0x29   : >> { %1240 = vset.pattern.permute.xlu1 %v1347_v15  ;;  %v398_v15 = vadd.f32 1e-08, %v1335_v9 }
  0x2a   : >> { %251 = vperm.xlu1 %1240, %v213_v13  }
  0x2b   : >> { %1243 = vrcp.f32 %v398_v15 }
  0x2e   : >> { %1241 = vset.pattern.permute.xlu1 %v1349_v10 }
  0x38   : >> { %v1244_v16 = vpop.eup %1243 }
  0x3b   : >> { %221 = vperm.xlu0 %1238, %v213_v13  }
  0x3f   : >> { %1242 = vset.pattern.permute.xlu0 %v1349_v10 }
  0xa0   : >> { %v236_v17 = vpop.permute.xlu1 %235 }
  0xa1   : >> { %v246_v28 = vmul.f32 %v1487_v21, %v236_v17  ;;  %v247_v29 = vmul.f32 %v1490_v22, %v236_v17  ;;  %v400_v17 = vmul.f32 0.9, %v1244_v16 }
  0xa3   : >> { %v401_v19 = vadd.f32 0.1, %v400_v17 }
  0xa5   : >> { %v252_v27 = vpop.permute.xlu1 %251 }
  0xa6   : >> { %v262_v33 = vmul.f32 %v1501_v25, %v252_v27  ;;  %v263_v34 = vmul.f32 %v1504_v26, %v252_v27 }
  0xae   : >> { %v218_v20 = vpop.xlane.xlu0 %217 }
  0xb6   : >> { %v222_v30 = vpop.permute.xlu0 %221 }
  0xb7   : >> { %v232_v31 = vmul.f32 %v1494_v23, %v222_v30  ;;  %v233_v32 = vmul.f32 %v1498_v24, %v222_v30 }
  0xb9   : >> { %v248_v35 = vadd.f32 %v246_v28, %v232_v31  ;;  %v249_v36 = vadd.f32 %v247_v29, %v233_v32 }
  0xbb   : >> { %v264_v37 = vadd.f32 %v262_v33, %v248_v35  ;;  %v265_v38 = vadd.f32 %v263_v34, %v249_v36 }
  0xbd   : >> { %v266_v39 = vsub.f32 %v264_v37, %v218_v20  ;;  %v267_v40 = vsub.f32 %v265_v38, %v218_v20  ;;  %v402_v20 = vsub.f32 1.0, %v401_v19 }
  0xbf   : >> { %vm270_vm3 = vcmp.ge.s32.totalorder %v266_v39, 0  ;;  %vm271_vm4 = vcmp.ge.s32.totalorder %v267_v40, 0  ;;  %v272_v41 = vsub.s32 2147483648, %v266_v39  ;;  %v273_v42 = vsub.s32 2147483648, %v267_v40  ;;  %405 = vperm.xlu0 %1242, %v402_v20  }
  0xc1   : >> { %v274_v43 = vsel %vm270_vm3, %v266_v39, %v272_v41  ;;  %v275_v44 = vsel %vm271_vm4, %v267_v40, %v273_v42 }
  0xc2   : >> { %v276_v45 = vand.u32 4294967288, %v274_v43  ;;  %v277_v46 = vand.u32 4294967288, %v275_v44 }
  0xc4   : >> { %v278_v47 = vor.u32 %v276_v45, %v198_v8  ;;  %v279_v48 = vor.u32 %v277_v46, %v198_v8 }
  0xc6   : >> { %v289_v49 = vrot.slane %v279_v48, 4  ;;  %v280_v50 = vrot.slane %v278_v47, 4 }
  0xc8   : >> { %vm290_vm5 = vcmp.gt.s32.totalorder %v279_v48, %v289_v49  ;;  %vm281_vm6 = vcmp.gt.s32.totalorder %v278_v47, %v280_v50 }
  0xc9   : >> { %v291_v51 = vsel %vm290_vm5, %v279_v48, %v289_v49  ;;  %v282_v52 = vsel %vm281_vm6, %v278_v47, %v280_v50 }
  0xca   : >> { %v292_v53 = vrot.slane %v291_v51, 2  ;;  %v283_v54 = vrot.slane %v282_v52, 2 }
  0xcc   : >> { %vm293_vm7 = vcmp.gt.s32.totalorder %v291_v51, %v292_v53  ;;  %vm284_vm8 = vcmp.gt.s32.totalorder %v282_v52, %v283_v54 }
  0xcd   : >> { %v294_v55 = vsel %vm293_vm7, %v291_v51, %v292_v53  ;;  %v285_v56 = vsel %vm284_vm8, %v282_v52, %v283_v54 }
  0xce   : >> { %v295_v57 = vrot.slane %v294_v55, 1  ;;  %v286_v58 = vrot.slane %v285_v56, 1 }
  0xd0   : >> { %vm296_vm9 = vcmp.gt.s32.totalorder %v294_v55, %v295_v57  ;;  %vm287_vm10 = vcmp.gt.s32.totalorder %v285_v56, %v286_v58 }
  0xd1   : >> { %v297_v59 = vsel %vm296_vm9, %v294_v55, %v295_v57  ;;  %v288_v60 = vsel %vm287_vm10, %v285_v56, %v286_v58 }
  0xd2   : >> { %v299_v61 = vand.u32 7, %v297_v59  ;;  %v298_v62 = vand.u32 7, %v288_v60 }
  0xd4   : >> { %v1516_v63 = vsub.s32 7, %v299_v61  ;;  %v1518_v0 = vsub.s32 7, %v298_v62 }
  0xd6   : >> { %vm303_vm11 = vcmp.eq.s32.totalorder %v1516_v63, %v1455_v6  ;;  %vm302_vm12 = vcmp.eq.s32.totalorder %v1518_v0, %v1455_v6 }
  0xd7   : >> { %1141 = vmatprep.mubr.msk.f32.mxu0 %vm303_vm11, %v1348_v4 }
  0xd8   : >> { %1142 = vmatmul.mubr.msk.f32.vlgmr.msra.gmra.mxu0 %vm302_vm12, %v1348_v4 }
 0x13a   : >> { %v406_v33 = vpop.permute.xlu0 %405 }
 0x13b   : >> { %v408_v36 = vmul.f32 %v1339_v3, %v406_v33 }
 0x198   : >> { %v374_v11 = vpop.f32.mrf.mxu0 }
 0x199   : >> { %v378_v12 = vadd.f32 1e-08, %v374_v11  ;;  %v416_v13 = vadd.f32 %v1335_v9, %v374_v11  }
 0x19a   : >> { %v376_v14 = vpop.f32.mrf.mxu0 }
 0x19b   : >> { %381 = vperm.xlu1 %1241, %v378_v12  }
 0x216   : >> { %v382_v27 = vpop.permute.xlu1 %381 }
 0x217   : >> { %1245 = vrcp.f32 %v382_v27 }
 0x224   : >> { %v1246_v28 = vpop.eup %1245 }
 0x225   : >> { %v385_v29 = vmul.f32 %v1246_v28, %v374_v11 }
 0x227   : >> { %v386_v30 = vsub.f32 %v385_v29, %v1339_v3 }
 0x229   : >> { %v387_v31 = vmul.f32 %v386_v30, %v386_v30 }
 0x22b   : >> { %v388_v32 = vsel %vm215_vm2, %v387_v31, 0.0 }
 0x22c   : >> { %389 = vadd.xlane.f32.xlu1 %v388_v32 }
 0x23d   : >> { %411 = vperm.xlu1 %1241, %v401_v19  }
 0x2b5   : >> { %v390_v9 = vpop.xlane.xlu1 %389 }
 0x2b6   : >> { %v391_v34 = vrot.slane %v390_v9, 4 }
 0x2b8   : >> { %v392_v35 = vadd.f32 %v391_v34, %v390_v9  ;;  %v1663_v9 = vmov %v416_v13 }
 0x2b9   : >> { %v412_v37 = vpop.permute.xlu1 %411 }
 0x2ba   : >> { %v393_v38 = vrot.slane %v392_v35, 2  ;;  %v414_v39 = vmul.f32 %v412_v37, %v385_v29 }
 0x2bc   : >> { %v415_v40 = vadd.f32 %v414_v39, %v408_v36   ;;  %v394_v41 = vadd.f32 %v393_v38, %v392_v35 }
 0x2be   : >> { %v395_v42 = vrot.slane %v394_v41, 1  ;;  %v1664_v3 = vmov %v415_v40 }
 0x2c0   : >> { %v396_v43 = vadd.f32 %v395_v42, %v394_v41 }
 0x2c2   : >> { %1163 = vpush %v396_v43 }
 0x2f3   : >> { %s1164_s20 = spop %1163 }
 0x2f4   : >> { %p417_p12 = scmp.le.f32.partialorder %s1164_s20, 0.0001 }
 0x2f6   : >> { %p208_p0 = pneg %p417_p12 }
 0x2f8   : >> { %p209_p1 = pnand %p208_p0, %p207_p13 }
 0x2f9   : > { %s1159_s22 = sshll.u32 (%p209_p1), %s1401_s19, 4  ;;  %v469_v45 = vmul.f32 (%p209_p1), %v415_v40, %v415_v40  ;;  %v468_v46 = vmul.f32 (%p209_p1), 2.0, %v415_v40 }
 0x2fa   : > { %212 = sbr.rel (!%p209_p1) target bundleno = 34 (0x22), region = 130  ;;  %s422_s29 = scalar_lea.vmem (%p209_p1), %s1657_s1, %s1159_s22 }
 0x2fb   : > { %v1546_v3 = vld [vmem:[%s422_s29] sm:$0xff] (%p209_p1)  ;;  %v1548_v44 = vld [vmem:[%s422_s29 + $0x8] sm:$0xff] (%p209_p1) }
 0x2ff   : > { %467 = vsyncadd [#allocation5], 256  ;;  %911 = vst.msk [vmem:[#allocation2] sm:$0xff] %vm215_vm2, %v415_v40  ;;  %v1350_v47 = vmov 1   ;;  %v1351_v5 = vmov 0   ;;  %v471_v7 = vsel %vm215_vm2, %v469_v45, 0.0  ;;  %v474_v48 = vmul.f32 %v1447_v1, %v1447_v1 }
 0x300   : > { %912 = vst.msk [vmem:[%s1439_s10] sm:$0xff] %vm215_vm2, %v415_v40  ;;  %1248 = vset.pattern.permute.xlu1 %v1350_v47  ;;  %1247 = vset.pattern.permute.xlu0 %v1351_v5  ;;  %v1352_v8 = vmov 2   ;;  %v540_v55 = vsub.s32 4, %v1455_v6  ;;  %v557_v13 = vand.u32 127, %v196_v2 }
 0x301   : > { %500 = vperm.xlu1 %1248, %v468_v46   ;;  %472 = vadd.xlane.f32.xlu0 %v471_v7  ;;  %v1145_v49 = vrot.slane %v474_v48, 9  ;;  %v1146_v52 = vrot.slane %v474_v48, 10 }
 0x302   : > { %v558_v19 = vadd.s32 128, %v557_v13 }
 0x303   : > { %v479_v51 = vadd.f32 %v1145_v49, %v474_v48 }
 0x304   : > { %v560_v20 = vsub.s32 255, %v558_v19 }
 0x305   : > { %1249 = vset.pattern.permute.xlu1 %v1352_v8  ;;  %v483_v54 = vadd.f32 %v1146_v52, %v479_v51 }
 0x306   : > { %516 = vperm.xlu1 %1249, %v468_v46  }
 0x307   : > { %v537_v60 = vrot.slane %v483_v54, %v1483_v18  ;;  %v541_v61 = vrot.slane %v483_v54, %v540_v55 }
 0x317   : > { %486 = vperm.xlu0 %1247, %v468_v46  }
 0x31b   : > { %1250 = vset.pattern.permute.xlu0 %v1352_v8 }
 0x37c   : > { %v501_v50 = vpop.permute.xlu1 %500 }
 0x37d   : > { %v511_v57 = vmul.f32 %v501_v50, %v1487_v21  ;;  %v512_v58 = vmul.f32 %v501_v50, %v1490_v22  ;;  %v547_v21 = vrot.slane %v537_v60, %v1483_v18  ;;  %v551_v22 = vrot.slane %v541_v61, %v1483_v18 }
 0x381   : > { %v517_v56 = vpop.permute.xlu1 %516 }
 0x382   : > { %v527_v4 = vmul.f32 %v517_v56, %v1501_v25  ;;  %v528_v10 = vmul.f32 %v517_v56, %v1504_v26  ;;  %v559_v26 = vsub.s32 255, %v557_v13 }
 0x38a   : > { %v473_v53 = vpop.xlane.xlu0 %472 }
 0x392   : > { %v487_v59 = vpop.permute.xlu0 %486 }
 0x393   : > { %v497_v62 = vmul.f32 %v487_v59, %v1494_v23  ;;  %v498_v1 = vmul.f32 %v487_v59, %v1498_v24 }
 0x395   : > { %v513_v11 = vadd.f32 %v511_v57, %v497_v62  ;;  %v514_v12 = vadd.f32 %v512_v58, %v498_v1 }
 0x397   : > { %v529_v14 = vadd.f32 %v527_v4, %v513_v11  ;;  %v530_v15 = vadd.f32 %v528_v10, %v514_v12 }
 0x399   : > { %v531_v16 = vsub.f32 %v529_v14, %v473_v53  ;;  %v532_v17 = vsub.f32 %v530_v15, %v473_v53 }
 0x39b   : > { %v1567_v23 = vsub.f32 %v531_v16, %v547_v21  ;;  %v1569_v24 = vsub.f32 %v532_v17, %v551_v22 }
 0x39d   : > { %vm563_vm13 = vcmp.ge.s32.totalorder %v1567_v23, 0  ;;  %vm564_vm14 = vcmp.ge.s32.totalorder %v1569_v24, 0  ;;  %v565_v25 = vsub.s32 2147483648, %v1567_v23  ;;  %v566_v2 = vsub.s32 2147483648, %v1569_v24 }
 0x39f   : > { %v567_v18 = vsel %vm563_vm13, %v1567_v23, %v565_v25  ;;  %v568_v27 = vsel %vm564_vm14, %v1569_v24, %v566_v2 }
 0x3a0   : > { %v569_v28 = vand.u32 4294967040, %v567_v18  ;;  %v570_v29 = vand.u32 4294967040, %v568_v27 }
 0x3a2   : > { %v571_v30 = vor.u32 %v569_v28, %v559_v26  ;;  %v572_v31 = vor.u32 %v570_v29, %v560_v20 }
 0x3a4   : > { %v573_v32 = vsel %vm302_vm12, %v571_v30, 2147483648  ;;  %v574_v9 = vsel %vm303_vm11, %v572_v31, 2147483648 }
 0x3a5   : > { %vm575_vm15 = vcmp.gt.s32.totalorder %v573_v32, %v574_v9 }
 0x3a6   : > { %v576_v33 = vsel %vm575_vm15, %v573_v32, %v574_v9 }
 0x3a7   : > { %v578_v34 = vshra.s32 %v576_v33, 16  ;;  %v577_v36 = vand.u32 65535, %v576_v33 }
 0x3a9   : > { %v580_v35 = vcvt.s32.f32 %v578_v34  ;;  %v579_v38 = vcvt.s32.f32 %v577_v36 }
 0x3ab   : > { %581 = vmax.xlane.f32.xlu1 %v580_v35 }
 0x434   : > { %v582_v37 = vpop.xlane.xlu1 %581 }
 0x435   : > { %vm583_vm0 = vcmp.eq.f32.partialorder %v580_v35, %v582_v37  ;;  %v588_v40 = vcvt.f32.s32 %v582_v37 }
 0x436   : > { %v584_v39 = vsel %vm583_vm0, %v579_v38, -inf }
 0x437   : > { %585 = vmax.xlane.f32.xlu1 %v584_v39  ;;  %v589_v42 = vshll.u32 %v588_v40, 16 }
 0x4c0   : > { %v586_v41 = vpop.xlane.xlu1 %585 }
 0x4c1   : > { %v587_v43 = vcvt.f32.s32 %v586_v41 }
 0x4c3   : > { %v590_v45 = vadd.s32 %v589_v42, %v587_v43 }
 0x4c5   : > { %vm591_vm1 = vcmp.eq.s32.totalorder %v573_v32, %v590_v45  ;;  %vm592_vm2 = vcmp.eq.s32.totalorder %v574_v9, %v590_v45 }
 0x4c6   : > { %v593_v46 = vsel %vm591_vm1, 2147483648, %v573_v32  ;;  %v594_v47 = vsel %vm592_vm2, 2147483648, %v574_v9 }
 0x4c7   : > { %vm595_vm3 = vcmp.gt.s32.totalorder %v593_v46, %v594_v47 }
 0x4c8   : > { %v596_v5 = vsel %vm595_vm3, %v593_v46, %v594_v47 }
 0x4c9   : > { %v598_v7 = vshra.s32 %v596_v5, 16  ;;  %v597_v48 = vand.u32 65535, %v596_v5 }
 0x4cb   : > { %v600_v8 = vcvt.s32.f32 %v598_v7  ;;  %v599_v50 = vcvt.s32.f32 %v597_v48 }
 0x4cd   : > { %601 = vmax.xlane.f32.xlu0 %v600_v8 }
 0x556   : > { %v602_v49 = vpop.xlane.xlu0 %601 }
 0x557   : > { %vm603_vm4 = vcmp.eq.f32.partialorder %v600_v8, %v602_v49  ;;  %v608_v52 = vcvt.f32.s32 %v602_v49 }
 0x558   : > { %v604_v51 = vsel %vm603_vm4, %v599_v50, -inf }
 0x559   : > { %605 = vmax.xlane.f32.xlu1 %v604_v51  ;;  %v609_v54 = vshll.u32 %v608_v52, 16 }
 0x5e2   : > { %v606_v53 = vpop.xlane.xlu1 %605 }
 0x5e3   : > { %v607_v55 = vcvt.f32.s32 %v606_v53 }
 0x5e5   : > { %v610_v56 = vadd.s32 %v609_v54, %v607_v55 }
 0x5e7   : > { %vm611_vm5 = vcmp.eq.s32.totalorder %v593_v46, %v610_v56  ;;  %vm612_vm6 = vcmp.eq.s32.totalorder %v594_v47, %v610_v56 }
 0x5e8   : > { %v613_v57 = vsel %vm611_vm5, 2147483648, %v593_v46  ;;  %v614_v58 = vsel %vm612_vm6, 2147483648, %v594_v47 }
 0x5e9   : > { %vm615_vm7 = vcmp.gt.s32.totalorder %v613_v57, %v614_v58 }
 0x5ea   : > { %v616_v59 = vsel %vm615_vm7, %v613_v57, %v614_v58 }
 0x5eb   : > { %v618_v60 = vshra.s32 %v616_v59, 16  ;;  %v617_v62 = vand.u32 65535, %v616_v59 }
 0x5ed   : > { %v620_v61 = vcvt.s32.f32 %v618_v60  ;;  %v619_v4 = vcvt.s32.f32 %v617_v62 }
 0x5ef   : > { %621 = vmax.xlane.f32.xlu1 %v620_v61 }
 0x678   : > { %v622_v1 = vpop.xlane.xlu1 %621 }
 0x679   : > { %vm623_vm8 = vcmp.eq.f32.partialorder %v620_v61, %v622_v1  ;;  %v628_v11 = vcvt.f32.s32 %v622_v1 }
 0x67a   : > { %v624_v10 = vsel %vm623_vm8, %v619_v4, -inf }
 0x67b   : > { %625 = vmax.xlane.f32.xlu1 %v624_v10  ;;  %v629_v13 = vshll.u32 %v628_v11, 16 }
 0x704   : > { %v626_v12 = vpop.xlane.xlu1 %625 }
 0x705   : > { %v627_v21 = vcvt.f32.s32 %v626_v12 }
 0x707   : > { %v630_v22 = vadd.s32 %v629_v13, %v627_v21 }
 0x709   : > { %vm631_vm9 = vcmp.eq.s32.totalorder %v613_v57, %v630_v22  ;;  %vm632_vm10 = vcmp.eq.s32.totalorder %v614_v58, %v630_v22 }
 0x70a   : > { %v633_v14 = vsel %vm631_vm9, 2147483648, %v613_v57  ;;  %v634_v15 = vsel %vm632_vm10, 2147483648, %v614_v58 }
 0x70b   : > { %vm635_vm13 = vcmp.gt.s32.totalorder %v633_v14, %v634_v15 }
 0x70c   : > { %v636_v16 = vsel %vm635_vm13, %v633_v14, %v634_v15 }
 0x70d   : > { %v638_v17 = vshra.s32 %v636_v16, 16  ;;  %v637_v25 = vand.u32 65535, %v636_v16 }
 0x70f   : > { %v640_v19 = vcvt.s32.f32 %v638_v17  ;;  %v639_v26 = vcvt.s32.f32 %v637_v25 }
 0x711   : > { %641 = vmax.xlane.f32.xlu1 %v640_v19 }
 0x79a   : > { %v642_v2 = vpop.xlane.xlu1 %641 }
 0x79b   : > { %vm643_vm14 = vcmp.eq.f32.partialorder %v640_v19, %v642_v2  ;;  %v648_v18 = vcvt.f32.s32 %v642_v2 }
 0x79c   : > { %v644_v20 = vsel %vm643_vm14, %v639_v26, -inf }
 0x79d   : > { %645 = vmax.xlane.f32.xlu1 %v644_v20  ;;  %v649_v28 = vshll.u32 %v648_v18, 16 }
 0x826   : > { %v646_v27 = vpop.xlane.xlu1 %645 }
 0x827   : > { %v647_v29 = vcvt.f32.s32 %v646_v27 }
 0x829   : > { %v650_v30 = vadd.s32 %v649_v28, %v647_v29 }
 0x82b   : > { %vm651_vm15 = vcmp.eq.s32.totalorder %v633_v14, %v650_v30  ;;  %vm652_vm0 = vcmp.eq.s32.totalorder %v634_v15, %v650_v30 }
 0x82c   : > { %v653_v31 = vsel %vm651_vm15, 2147483648, %v633_v14  ;;  %v654_v32 = vsel %vm652_vm0, 2147483648, %v634_v15 }
 0x82d   : > { %vm655_vm1 = vcmp.gt.s32.totalorder %v653_v31, %v654_v32 }
 0x82e   : > { %v656_v9 = vsel %vm655_vm1, %v653_v31, %v654_v32 }
 0x82f   : > { %v658_v33 = vshra.s32 %v656_v9, 16  ;;  %v657_v35 = vand.u32 65535, %v656_v9 }
 0x831   : > { %v660_v34 = vcvt.s32.f32 %v658_v33  ;;  %v659_v37 = vcvt.s32.f32 %v657_v35 }
 0x833   : > { %661 = vmax.xlane.f32.xlu1 %v660_v34 }
 0x8bc   : > { %v662_v36 = vpop.xlane.xlu1 %661 }
 0x8bd   : > { %vm663_vm2 = vcmp.eq.f32.partialorder %v660_v34, %v662_v36  ;;  %v668_v39 = vcvt.f32.s32 %v662_v36 }
 0x8be   : > { %v664_v38 = vsel %vm663_vm2, %v659_v37, -inf }
 0x8bf   : > { %665 = vmax.xlane.f32.xlu1 %v664_v38  ;;  %v669_v41 = vshll.u32 %v668_v39, 16 }
 0x948   : > { %v666_v40 = vpop.xlane.xlu1 %665 }
 0x949   : > { %v667_v42 = vcvt.f32.s32 %v666_v40 }
 0x94b   : > { %v670_v43 = vadd.s32 %v669_v41, %v667_v42 }
 0x94d   : > { %vm671_vm3 = vcmp.eq.s32.totalorder %v653_v31, %v670_v43  ;;  %vm672_vm4 = vcmp.eq.s32.totalorder %v654_v32, %v670_v43 }
 0x94e   : > { %v673_v45 = vsel %vm671_vm3, 2147483648, %v653_v31  ;;  %v674_v46 = vsel %vm672_vm4, 2147483648, %v654_v32 }
 0x94f   : > { %vm675_vm5 = vcmp.gt.s32.totalorder %v673_v45, %v674_v46 }
 0x950   : > { %v676_v47 = vsel %vm675_vm5, %v673_v45, %v674_v46 }
 0x951   : > { %v678_v5 = vshra.s32 %v676_v47, 16  ;;  %v677_v8 = vand.u32 65535, %v676_v47 }
 0x953   : > { %v680_v7 = vcvt.s32.f32 %v678_v5  ;;  %v679_v49 = vcvt.s32.f32 %v677_v8 }
 0x955   : > { %681 = vmax.xlane.f32.xlu1 %v680_v7 }
 0x9de   : > { %v682_v48 = vpop.xlane.xlu1 %681 }
 0x9df   : > { %vm683_vm6 = vcmp.eq.f32.partialorder %v680_v7, %v682_v48  ;;  %v688_v51 = vcvt.f32.s32 %v682_v48 }
 0x9e0   : > { %v684_v50 = vsel %vm683_vm6, %v679_v49, -inf }
 0x9e1   : > { %685 = vmax.xlane.f32.xlu0 %v684_v50  ;;  %v689_v53 = vshll.u32 %v688_v51, 16 }
 0xa6a   : > { %v686_v52 = vpop.xlane.xlu0 %685 }
 0xa6b   : > { %v687_v54 = vcvt.f32.s32 %v686_v52 }
 0xa6d   : > { %v690_v55 = vadd.s32 %v689_v53, %v687_v54 }
 0xa6f   : > { %vm691_vm7 = vcmp.eq.s32.totalorder %v673_v45, %v690_v55  ;;  %vm692_vm8 = vcmp.eq.s32.totalorder %v674_v46, %v690_v55 }
 0xa70   : > { %v693_v56 = vsel %vm691_vm7, 2147483648, %v673_v45  ;;  %v694_v57 = vsel %vm692_vm8, 2147483648, %v674_v46 }
 0xa71   : > { %vm695_vm9 = vcmp.gt.s32.totalorder %v693_v56, %v694_v57 }
 0xa72   : > { %v696_v58 = vsel %vm695_vm9, %v693_v56, %v694_v57 }
 0xa73   : > { %v698_v59 = vshra.s32 %v696_v58, 16  ;;  %v697_v61 = vand.u32 65535, %v696_v58 }
 0xa75   : > { %v700_v60 = vcvt.s32.f32 %v698_v59  ;;  %v699_v1 = vcvt.s32.f32 %v697_v61 }
 0xa77   : > { %701 = vmax.xlane.f32.xlu1 %v700_v60 }
 0xb00   : > { %v702_v62 = vpop.xlane.xlu1 %701 }
 0xb01   : > { %vm703_vm10 = vcmp.eq.f32.partialorder %v700_v60, %v702_v62  ;;  %v708_v10 = vcvt.f32.s32 %v702_v62 }
 0xb02   : > { %v704_v4 = vsel %vm703_vm10, %v699_v1, -inf }
 0xb03   : > { %705 = vmax.xlane.f32.xlu0 %v704_v4  ;;  %v709_v12 = vshll.u32 %v708_v10, 16 }
 0xb8c   : > { %v706_v11 = vpop.xlane.xlu0 %705 }
 0xb8d   : > { %v707_v13 = vcvt.f32.s32 %v706_v11 }
 0xb8f   : > { %v710_v21 = vadd.s32 %v709_v12, %v707_v13 }
 0xb91   : > { %vm711_vm13 = vcmp.eq.s32.totalorder %v693_v56, %v710_v21  ;;  %vm712_vm14 = vcmp.eq.s32.totalorder %v694_v57, %v710_v21 }
 0xb92   : > { %v713_v22 = vsel %vm711_vm13, 2147483648, %v693_v56  ;;  %v714_v14 = vsel %vm712_vm14, 2147483648, %v694_v57 }
 0xb93   : > { %vm715_vm15 = vcmp.gt.s32.totalorder %v713_v22, %v714_v14 }
 0xb94   : > { %v716_v15 = vsel %vm715_vm15, %v713_v22, %v714_v14 }
 0xb95   : > { %v718_v16 = vshra.s32 %v716_v15, 16  ;;  %v717_v19 = vand.u32 65535, %v716_v15 }
 0xb97   : > { %v720_v17 = vcvt.s32.f32 %v718_v16  ;;  %v719_v2 = vcvt.s32.f32 %v717_v19 }
 0xb99   : > { %721 = vmax.xlane.f32.xlu1 %v720_v17 }
 0xc22   : > { %v722_v25 = vpop.xlane.xlu1 %721 }
 0xc23   : > { %vm723_vm0 = vcmp.eq.f32.partialorder %v720_v17, %v722_v25  ;;  %v728_v20 = vcvt.f32.s32 %v722_v25 }
 0xc24   : > { %v724_v26 = vsel %vm723_vm0, %v719_v2, -inf }
 0xc25   : > { %725 = vmax.xlane.f32.xlu0 %v724_v26  ;;  %v729_v27 = vshll.u32 %v728_v20, 16 }
 0xcae   : > { %v726_v18 = vpop.xlane.xlu0 %725 }
 0xcaf   : > { %v727_v28 = vcvt.f32.s32 %v726_v18 }
 0xcb1   : > { %v730_v29 = vadd.s32 %v729_v27, %v727_v28 }
 0xcb3   : > { %vm731_vm1 = vcmp.eq.s32.totalorder %v713_v22, %v730_v29  ;;  %vm732_vm2 = vcmp.eq.s32.totalorder %v714_v14, %v730_v29 }
 0xcb4   : > { %v733_v30 = vsel %vm731_vm1, 2147483648, %v713_v22  ;;  %v734_v31 = vsel %vm732_vm2, 2147483648, %v714_v14 }
 0xcb5   : > { %vm735_vm3 = vcmp.gt.s32.totalorder %v733_v30, %v734_v31 }
 0xcb6   : > { %v736_v32 = vsel %vm735_vm3, %v733_v30, %v734_v31 }
 0xcb7   : > { %v738_v9 = vshra.s32 %v736_v32, 16  ;;  %v737_v34 = vand.u32 65535, %v736_v32 }
 0xcb9   : > { %v740_v33 = vcvt.s32.f32 %v738_v9  ;;  %v739_v36 = vcvt.s32.f32 %v737_v34 }
 0xcbb   : > { %741 = vmax.xlane.f32.xlu1 %v740_v33 }
 0xd44   : > { %v742_v35 = vpop.xlane.xlu1 %741 }
 0xd45   : > { %vm743_vm4 = vcmp.eq.f32.partialorder %v740_v33, %v742_v35  ;;  %v748_v38 = vcvt.f32.s32 %v742_v35 }
 0xd46   : > { %v744_v37 = vsel %vm743_vm4, %v739_v36, -inf }
 0xd47   : > { %745 = vmax.xlane.f32.xlu0 %v744_v37  ;;  %v749_v40 = vshll.u32 %v748_v38, 16 }
 0xdd0   : > { %v746_v39 = vpop.xlane.xlu0 %745 }
 0xdd1   : > { %v747_v41 = vcvt.f32.s32 %v746_v39 }
 0xdd3   : > { %v750_v42 = vadd.s32 %v749_v40, %v747_v41 }
 0xdd5   : > { %vm751_vm5 = vcmp.eq.s32.totalorder %v733_v30, %v750_v42  ;;  %vm752_vm6 = vcmp.eq.s32.totalorder %v734_v31, %v750_v42 }
 0xdd6   : > { %v753_v43 = vsel %vm751_vm5, 2147483648, %v733_v30  ;;  %v754_v45 = vsel %vm752_vm6, 2147483648, %v734_v31 }
 0xdd7   : > { %vm755_vm7 = vcmp.gt.s32.totalorder %v753_v43, %v754_v45 }
 0xdd8   : > { %v756_v46 = vsel %vm755_vm7, %v753_v43, %v754_v45 }
 0xdd9   : > { %v758_v47 = vshra.s32 %v756_v46, 16  ;;  %v757_v7 = vand.u32 65535, %v756_v46 }
 0xddb   : > { %v760_v5 = vcvt.s32.f32 %v758_v47  ;;  %v759_v48 = vcvt.s32.f32 %v757_v7 }
 0xddd   : > { %761 = vmax.xlane.f32.xlu1 %v760_v5 }
 0xe66   : > { %v762_v8 = vpop.xlane.xlu1 %761 }
 0xe67   : > { %vm763_vm8 = vcmp.eq.f32.partialorder %v760_v5, %v762_v8  ;;  %v768_v50 = vcvt.f32.s32 %v762_v8 }
 0xe68   : > { %v764_v49 = vsel %vm763_vm8, %v759_v48, -inf }
 0xe69   : > { %765 = vmax.xlane.f32.xlu0 %v764_v49  ;;  %v769_v52 = vshll.u32 %v768_v50, 16 }
 0xef2   : > { %v766_v51 = vpop.xlane.xlu0 %765 }
 0xef3   : > { %v767_v53 = vcvt.f32.s32 %v766_v51 }
 0xef5   : > { %v770_v54 = vadd.s32 %v769_v52, %v767_v53 }
 0xef7   : > { %vm771_vm9 = vcmp.eq.s32.totalorder %v753_v43, %v770_v54  ;;  %vm772_vm10 = vcmp.eq.s32.totalorder %v754_v45, %v770_v54 }
 0xef8   : > { %v773_v55 = vsel %vm771_vm9, 2147483648, %v753_v43  ;;  %v774_v56 = vsel %vm772_vm10, 2147483648, %v754_v45 }
 0xef9   : > { %vm775_vm13 = vcmp.gt.s32.totalorder %v773_v55, %v774_v56 }
 0xefa   : > { %v776_v57 = vsel %vm775_vm13, %v773_v55, %v774_v56 }
 0xefb   : > { %v778_v58 = vshra.s32 %v776_v57, 16  ;;  %v777_v60 = vand.u32 65535, %v776_v57 }
 0xefd   : > { %v780_v59 = vcvt.s32.f32 %v778_v58  ;;  %v779_v62 = vcvt.s32.f32 %v777_v60  ;;  %v880_v60 = vsel %vm303_vm11, %v1569_v24, -1e+30 }
 0xeff   : > { %781 = vmax.xlane.f32.xlu1 %v780_v59 }
 0xf88   : > { %v782_v61 = vpop.xlane.xlu1 %781 }
 0xf89   : > { %vm783_vm14 = vcmp.eq.f32.partialorder %v780_v59, %v782_v61  ;;  %v788_v4 = vcvt.f32.s32 %v782_v61  ;;  %v879_v59 = vsel %vm302_vm12, %v1567_v23, -1e+30 }
 0xf8a   : > { %v784_v1 = vsel %vm783_vm14, %v779_v62, -inf  ;;  %v881_v61 = vmax.f32 %v879_v59, %v880_v60 }
 0xf8b   : > { %785 = vmax.xlane.f32.xlu0 %v784_v1  ;;  %v789_v11 = vshll.u32 %v788_v4, 16 }
0x1014   : > { %v786_v10 = vpop.xlane.xlu0 %785 }
0x1015   : > { %v787_v12 = vcvt.f32.s32 %v786_v10 }
0x1017   : > { %v790_v13 = vadd.s32 %v789_v11, %v787_v12 }
0x1019   : > { %vm791_vm15 = vcmp.eq.s32.totalorder %v773_v55, %v790_v13  ;;  %vm792_vm0 = vcmp.eq.s32.totalorder %v774_v56, %v790_v13 }
0x101a   : > { %v793_v21 = vsel %vm791_vm15, 2147483648, %v773_v55  ;;  %v794_v22 = vsel %vm792_vm0, 2147483648, %v774_v56 }
0x101b   : > { %vm795_vm1 = vcmp.gt.s32.totalorder %v793_v21, %v794_v22 }
0x101c   : > { %v796_v14 = vsel %vm795_vm1, %v793_v21, %v794_v22 }
0x101d   : > { %v798_v15 = vshra.s32 %v796_v14, 16  ;;  %v797_v17 = vand.u32 65535, %v796_v14 }
0x101f   : > { %v800_v16 = vcvt.s32.f32 %v798_v15  ;;  %v799_v25 = vcvt.s32.f32 %v797_v17 }
0x1021   : > { %801 = vmax.xlane.f32.xlu1 %v800_v16 }
0x10aa   : > { %v802_v19 = vpop.xlane.xlu1 %801 }
0x10ab   : > { %vm803_vm2 = vcmp.eq.f32.partialorder %v800_v16, %v802_v19  ;;  %v808_v26 = vcvt.f32.s32 %v802_v19 }
0x10ac   : > { %v804_v2 = vsel %vm803_vm2, %v799_v25, -inf }
0x10ad   : > { %805 = vmax.xlane.f32.xlu0 %v804_v2  ;;  %v809_v18 = vshll.u32 %v808_v26, 16 }
0x1136   : > { %v806_v20 = vpop.xlane.xlu0 %805 }
0x1137   : > { %v807_v27 = vcvt.f32.s32 %v806_v20 }
0x1139   : > { %v810_v28 = vadd.s32 %v809_v18, %v807_v27 }
0x113b   : > { %vm811_vm3 = vcmp.eq.s32.totalorder %v793_v21, %v810_v28  ;;  %vm812_vm4 = vcmp.eq.s32.totalorder %v794_v22, %v810_v28 }
0x113c   : > { %v813_v29 = vsel %vm811_vm3, 2147483648, %v793_v21  ;;  %v814_v30 = vsel %vm812_vm4, 2147483648, %v794_v22 }
0x113d   : > { %vm815_vm5 = vcmp.gt.s32.totalorder %v813_v29, %v814_v30 }
0x113e   : > { %v816_v31 = vsel %vm815_vm5, %v813_v29, %v814_v30 }
0x113f   : > { %v818_v32 = vshra.s32 %v816_v31, 16  ;;  %v817_v33 = vand.u32 65535, %v816_v31  ;;  %v1151_v31 = vcombine.high %v1546_v3, %v1548_v44 }
0x1141   : > { %v820_v9 = vcvt.s32.f32 %v818_v32  ;;  %v819_v35 = vcvt.s32.f32 %v817_v33  ;;  %v1150_v32 = vcombine.low %v1546_v3, %v1548_v44 }
0x1143   : > { %821 = vmax.xlane.f32.xlu1 %v820_v9 }
0x11cc   : > { %v822_v34 = vpop.xlane.xlu1 %821 }
0x11cd   : > { %vm823_vm6 = vcmp.eq.f32.partialorder %v820_v9, %v822_v34  ;;  %v828_v37 = vcvt.f32.s32 %v822_v34 }
0x11ce   : > { %v824_v36 = vsel %vm823_vm6, %v819_v35, -inf }
0x11cf   : > { %825 = vmax.xlane.f32.xlu0 %v824_v36  ;;  %v829_v39 = vshll.u32 %v828_v37, 16 }
0x1258   : > { %v826_v38 = vpop.xlane.xlu0 %825 }
0x1259   : > { %v827_v40 = vcvt.f32.s32 %v826_v38 }
0x125b   : > { %v830_v41 = vadd.s32 %v829_v39, %v827_v40 }
0x125d   : > { %vm831_vm7 = vcmp.eq.s32.totalorder %v813_v29, %v830_v41  ;;  %vm832_vm8 = vcmp.eq.s32.totalorder %v814_v30, %v830_v41 }
0x125e   : > { %v833_v42 = vsel %vm831_vm7, 2147483648, %v813_v29  ;;  %v834_v43 = vsel %vm832_vm8, 2147483648, %v814_v30  ;;  %v1353_v29 = vmov 0.0  }
0x125f   : > { %vm835_vm9 = vcmp.gt.s32.totalorder %v833_v42, %v834_v43 }
0x1260   : > { %v836_v45 = vsel %vm835_vm9, %v833_v42, %v834_v43 }
0x1261   : > { %v838_v46 = vshra.s32 %v836_v45, 16  ;;  %v837_v5 = vand.u32 65535, %v836_v45 }
0x1263   : > { %v840_v47 = vcvt.s32.f32 %v838_v46  ;;  %v839_v8 = vcvt.s32.f32 %v837_v5 }
0x1265   : > { %841 = vmax.xlane.f32.xlu1 %v840_v47 }
0x12ee   : > { %v842_v7 = vpop.xlane.xlu1 %841 }
0x12ef   : > { %vm843_vm10 = vcmp.eq.f32.partialorder %v840_v47, %v842_v7  ;;  %v848_v49 = vcvt.f32.s32 %v842_v7 }
0x12f0   : > { %v844_v48 = vsel %vm843_vm10, %v839_v8, -inf }
0x12f1   : > { %845 = vmax.xlane.f32.xlu0 %v844_v48  ;;  %v849_v51 = vshll.u32 %v848_v49, 16 }
0x137a   : > { %v846_v50 = vpop.xlane.xlu0 %845 }
0x137b   : > { %v847_v52 = vcvt.f32.s32 %v846_v50 }
0x137d   : > { %v850_v53 = vadd.s32 %v849_v51, %v847_v52 }
0x137f   : > { %vm851_vm13 = vcmp.eq.s32.totalorder %v833_v42, %v850_v53  ;;  %vm852_vm14 = vcmp.eq.s32.totalorder %v834_v43, %v850_v53 }
0x1380   : > { %v853_v54 = vsel %vm851_vm13, 2147483648, %v833_v42  ;;  %v854_v55 = vsel %vm852_vm14, 2147483648, %v834_v43 }
0x1381   : > { %vm855_vm15 = vcmp.gt.s32.totalorder %v853_v54, %v854_v55 }
0x1382   : > { %v856_v56 = vsel %vm855_vm15, %v853_v54, %v854_v55 }
0x1383   : > { %v858_v57 = vshra.s32 %v856_v56, 16  ;;  %v857_v62 = vand.u32 65535, %v856_v56 }
0x1385   : > { %v860_v58 = vcvt.s32.f32 %v858_v57  ;;  %v859_v4 = vcvt.s32.f32 %v857_v62 }
0x1387   : > { %861 = vmax.xlane.f32.xlu1 %v860_v58 }
0x138b   : > { %882 = vmax.xlane.f32.xlu1 %v881_v61 }
0x1410   : > { %v862_v1 = vpop.xlane.xlu1 %861 }
0x1411   : > { %vm863_vm0 = vcmp.eq.f32.partialorder %v860_v58, %v862_v1  ;;  %v868_v11 = vcvt.f32.s32 %v862_v1 }
0x1412   : > { %v864_v10 = vsel %vm863_vm0, %v859_v4, -inf }
0x1413   : > { %865 = vmax.xlane.f32.xlu0 %v864_v10  ;;  %v869_v13 = vshll.u32 %v868_v11, 16 }
0x1414   : > { %v883_v22 = vpop.xlane.xlu1 %882 }
0x1415   : > { %vm884_vm3 = vcmp.gt.f32.partialorder %v883_v22, -5e+29 }
0x1416   : > { %v885_v17 = vsel %vm884_vm3, %v883_v22, 0.0 }
0x149c   : > { %v866_v12 = vpop.xlane.xlu0 %865 }
0x149d   : > { %v867_v21 = vcvt.f32.s32 %v866_v12 }
0x149f   : > { %v870_v14 = vadd.s32 %v869_v13, %v867_v21 }
0x14a1   : > { %vm871_vm1 = vcmp.eq.s32.totalorder %v853_v54, %v870_v14  ;;  %vm872_vm2 = vcmp.eq.s32.totalorder %v854_v55, %v870_v14 }
0x14a2   : > { %v873_v15 = vsel %vm871_vm1, 2147483648, %v853_v54  ;;  %v874_v16 = vsel %vm872_vm2, 2147483648, %v854_v55 }
0x14a3   : > { %vm875_vm4 = vcmp.eq.s32.totalorder %v873_v15, 2147483648  ;;  %vm876_vm5 = vcmp.eq.s32.totalorder %v874_v16, 2147483648 }
0x14a4   : > { %vm877_vm6 = vmand %vm302_vm12, %vm875_vm4  ;;  %vm913_vm12 = vcmask 130048  }
0x14a5   : > { %vm878_vm7 = vmand %vm303_vm11, %vm876_vm5  ;;  %v886_v19 = vsel %vm877_vm6, %v1567_v23, -1e+30  ;;  %914 = vst.msk [vmem:[%s1441_s11] sm:$0xff] %vm913_vm12, %v1353_v29 }
0x14a6   : > { %v887_v25 = vsel %vm878_vm7, %v1569_v24, -1e+30  ;;  %v888_v2 = vsub.f32 %v886_v19, %v885_v17 }
0x14a7   : > { %v889_v26 = vsub.f32 %v887_v25, %v885_v17 }
0x14a8   : > { %v890_v20 = vmul.f32 1.442695, %v888_v2 }
0x14a9   : > { %v892_v18 = vmul.f32 1.442695, %v889_v26 }
0x14aa   : > { %1251 = vpow2.f32 %v890_v20 }
0x14ab   : > { %1253 = vpow2.f32 %v892_v18 }
0x14b7   : > { %v1252_v27 = vpop.eup %1251 }
0x14b8   : > { %v1254_v28 = vpop.eup %1253 }
0x14b9   : > { %v894_v0 = vadd.f32 %v1254_v28, %v1252_v27 }
0x14bb   : > { %895 = vadd.xlane.f32.xlu0 %v894_v0 }
0x1544   : > { %v896_v6 = vpop.xlane.xlu0 %895 }
0x1545   : > { %v897_v63 = vmax.f32 %v896_v6, 1e-30 }
0x1547   : > { %1255 = vrcp.f32 %v897_v63 }
0x1554   : > { %v1256_v23 = vpop.eup %1255 }
0x1555   : > { %v900_v30 = vmul.f32 %v1256_v23, %v1252_v27  ;;  %v901_v24 = vmul.f32 %v1256_v23, %v1254_v28 }
0x1557   : > { %v1162_v9 = vpack.c.bf16 %v901_v24, %v901_v24 }
0x1558   : > { %1311 = dma.done.wait [#allocation5], 256 }
0x1559   : > { %1312 = vsyncadd [#allocation5], 4294967040  ;;  %954 = vmatprep.subr.bf16.mxu0 %v1151_v31  ;;  %972 = vmatprep.mubr.bf16.mxu0 %v1162_v9  ;;  %v1161_v33 = vpack.c.bf16 %v900_v30, %v900_v30  ;;  %v920_v34 = vld [vmem:[%s1441_s11] sm:$0xff]  ;;  %s1153_s30 = sshll.u32 %s1401_s19, 7  ;;  %s1003_s5 = sshll.u32 %s1441_s11, 4  ;;  %s1613_s5 = int_to_ptr.vmem [resolvable:$true] %s1003_s5 }
0x155a   : > { %955 = vmatpush1.bf16.xpose.msra.mxu0 %v1150_v32  ;;  %s1611_s8 = scalar_lea.hbm %s1660_s4, %s1153_s30  ;;  %s987_s9 = scalar_lea.sflag [#allocation7], %s169_s27 }
0x155b   : > { %s1257_s19 = scalar_lea.vmem %s1613_s5, 128  ;;  %s1354_s10 = smov [#allocation6]  }
0x155c   : > { %p1258_p2 = scmp.ne.s32.totalorder %s1613_s5, %s1257_s19  ;;  %s1261_s12 = sshll.u32 %s1354_s10, 4  ;;  %s1262_s12 = int_to_ptr.vmem [resolvable:$false] %s1261_s12 }
0x155d   : > { %s1263_s13 = scalar_lea.vmem %s1262_s12, 256  ;;  %p1264_p7 = scmp.lt.s32.totalorder %s1613_s5, %s1262_s12 }
0x155e   : > { %p1259_p3 = pnand %p1258_p2, %p1418_p5  ;;  %p1265_p8 = scmp.lt.s32.totalorder %s1263_s13, %s1257_s19 }
0x1560   : > { %p1260_p4 = pneg %p1259_p3  ;;  %p1266_p9 = por %p1265_p8, %p1264_p7 }
0x1561   : > { %973 = vmatmul.mubr.bf16.vlgmr.msra.gmra.mxu0 %v1161_v33 }
0x1562   : > { %p1267_p10 = pnand %p1266_p9, %p1260_p4 }
0x1621   : > { %v974_v35 = vpop.f32.mrf.mxu0 }
0x1622   : > { %v980_v36 = vadd.f32 %v974_v35, %v920_v34 }
0x1623   : > { %v976_v3 = vpop.f32.mrf.mxu0 }
0x1624   : > { %981 = vst.msk [vmem:[%s1441_s11] sm:$0xff] %vm913_vm12, %v980_v36 }
0x1625   : > { %v977_v44 = vpop.f32.mrf.mxu0 }
0x1626   : > { %1270 = shalt.err (!%p1267_p10)
}
0x1627   : > { %s1271_s11 = scalar_lea.hbm %s1611_s8, 128  ;;  %s1275_s20 = scalar_lea.hbm %s1660_s4, 256 }
0x1628   : > { %p1272_p11 = scmp.ne.s32.totalorder %s1611_s8, %s1271_s11  ;;  %p1276_p0 = scmp.lt.s32.totalorder %s1611_s8, %s1660_s4 }
0x1629   : > { %p1277_p1 = scmp.lt.s32.totalorder %s1275_s20, %s1271_s11 }
0x162a   : > { %p1273_p12 = pnand %p1272_p11, %p1418_p5 }
0x162b   : > { %p1278_p2 = por %p1277_p1, %p1276_p0 }
0x162c   : > { %p1274_p13 = pneg %p1273_p12 }
0x162e   : > { %p1279_p3 = pnand %p1278_p2, %p1274_p13 }
0x1630   : > { %1282 = shalt.err (!%p1279_p3)
}
0x1631   : > { %1165 = dma.vmem_to_hbm [thread:$0]  (%p1418_p5), %s1613_s5, 128, %s1611_s8, %s987_s9   ;;  %v978_v37 = vpop.f32.mrf.mxu0 }
0x1632 PF: > { %p1171_p4 = scmp.ge.s32.totalorder %s1331_s18, 2  ;;  %s1022_s28 = sand.u32 1, %s1319_s15  }
0x1633   : > { %s1023_s29 = scalar_lea.sflag [#allocation7], %s1022_s28 }
0x1634   : > { %p1168_p7 = pnand %p1171_p4, %p1422_p6 }
0x1636   : > { %p1169_p8 = pneg %p1168_p7 }
0x1638   : > { %1314 = dma.done.wait (%p1169_p8), %s1023_s29, 128  }
0x1639   : > { %1316 = vsyncadd (%p1169_p8), %s1023_s29, 4294967168  ;;  %p15_p9 = scmp.ge.s32.totalorder %s1405_s21, 4   ;;  %s1665_s15 = smov %s1323_s16 }
0x163a   : > { %s1666_s16 = smov %s1327_s17  ;;  %s1667_s17 = smov %s1416_s24 }
0x163b   : > { %s1668_s18 = smov %s1405_s21  ;;  %17 = sbr.rel (!%p15_p9) target bundleno = 3 (0x3), region = 141 }
0x1640   :  { %1028 = vsyncpa [#allocation7], 1 }
0x1641   :  { %1030 = vsyncpa [#allocation7 + $0x1], 1 }
0x1642   :  { %1031 = vsyncmov [#allocation5] }
0x1645   :  { %s1032_s18 = vpop.sfrf %1031 }
0x1646   :  { %p1156_p5 = scmp.ne.s32.totalorder %s1032_s18, 0 }
0x1648   :  { %1036 = shalt.err (%p1156_p5)  }
0x1649   :  { %1038 = vsyncmov [#allocation5 + $0x1] }
0x164c   :  { %s1039_s25 = vpop.sfrf %1038 }
0x164d   :  { %p1157_p6 = scmp.ne.s32.totalorder %s1039_s25, 0 }
0x164f   :  { %1043 = shalt.err (%p1157_p6)  }

</bundles_post_ra>
